<compile_context>
chip_gen: v7x
topology: tpu7x:2x2x1
jax: 0.10.0
libtpu: 0.0.40
codegen_flags: <defaults>
</compile_context>

<pallas_src>
import functools

import jax
import jax.numpy as jnp
from jax.experimental import pallas as pl
from jax.experimental.pallas import tpu as pltpu


# Conservative cross-generation scoped-VMEM budget (fits v7x's 64 MiB physical
# with headroom; well under v5e/v6e's 128 MiB).
_VMEM_LIMIT = 48 * 1024 * 1024

# Single-buffer constant weights (they never change across the grid, so the
# default double buffering only wastes VMEM).
try:
    _WEIGHT_MODE = pl.Buffered(1)
except Exception:  # pragma: no cover - very old jax
    _WEIGHT_MODE = None


def _const_spec(shape, grid_rank):
    """BlockSpec for a grid-invariant (weight/bias/LN) parameter."""
    zeros = (0,) * len(shape)
    index_map = (lambda i: zeros) if grid_rank == 1 else (lambda i, j: zeros)
    if _WEIGHT_MODE is not None:
        try:
            return pl.BlockSpec(shape, index_map, pipeline_mode=_WEIGHT_MODE)
        except TypeError:  # pragma: no cover - pipeline_mode unsupported
            pass
    return pl.BlockSpec(shape, index_map)


def _row_tile(n_rows):
    # Largest multiple-of-8 row tile (<=512; 512 amortizes the ~0.35us
    # per-grid-step overhead on v5e/v6e, still fine on v7x at these widths).
    for t in (512, 256, 128, 64, 32, 16, 8):
        if n_rows % t == 0:
            return t
    return n_rows  # TODO(synk): pad instead for large non-multiple-of-8 inputs.


def _col_tile(n, cap=512):
    # Largest multiple-of-128 column tile <= cap dividing n; else full dim.
    t = cap
    while t >= 128:
        if n % t == 0:
            return t
        t //= 2
    return n


# ----------------------------------------------------------------------------
# Kernels
# ----------------------------------------------------------------------------

def layer_attn_kernel(x_ref, mem_ref,
                      s_wq, s_bq, s_wkv, s_bkv, s_wo, s_bo, ln1_g, ln1_b,
                      c_wq, c_bq, c_wkv, c_bkv, c_wo, c_bo, ln2_g, ln2_b,
                      out_ref, *, num_heads, eps=1e-5):
    """Fused {self-attn + res + LN1 ; cross-attn + res + LN2} for one batch
    element.  x is DMA'd once and reused for self-attn Q and KV sources."""

    def mha_ln(xq, xkv, wq, bq, wkv, bkv, wo, bo, g, b):
        Sq, D = xq.shape
        Sk = xkv.shape[0]
        hd = D // num_heads

        xq_b = xq.astype(jnp.bfloat16)
        xkv_b = xkv.astype(jnp.bfloat16)

        # Projections: Q separate (1/sqrt(hd) folded into wq/bq host-side),
        # K/V as one packed (D, 2D) bf16 matmul; f32 accumulation.
        q = jnp.dot(xq_b, wq[...], preferred_element_type=jnp.float32) + bq[...]
        kv = jnp.dot(xkv_b, wkv[...], preferred_element_type=jnp.float32) + bkv[...]
        k = kv[:, :D]
        v = kv[:, D:]

        # Head-batched contractions (leading-batch dot_general lowering path).
        qh = jnp.transpose(q.reshape(Sq, num_heads, hd), (1, 0, 2)).astype(jnp.bfloat16)
        kh = jnp.transpose(k.reshape(Sk, num_heads, hd), (1, 0, 2)).astype(jnp.bfloat16)
        vh = jnp.transpose(v.reshape(Sk, num_heads, hd), (1, 0, 2)).astype(jnp.bfloat16)

        s = jnp.einsum("hqd,hkd->hqk", qh, kh,
                       preferred_element_type=jnp.float32)
        s = s - jnp.max(s, axis=-1, keepdims=True)
        p = jnp.exp(s)
        p = p * pl.reciprocal(jnp.sum(p, axis=-1, keepdims=True), approx=True)

        ctx = jnp.einsum("hqk,hkd->hqd", p.astype(jnp.bfloat16), vh,
                         preferred_element_type=jnp.float32)      # (H, Sq, hd)
        ctx = jnp.transpose(ctx, (1, 0, 2)).reshape(Sq, D)

        attn = jnp.dot(ctx.astype(jnp.bfloat16), wo[...],
                       preferred_element_type=jnp.float32) + bo[...]

        # Residual + LayerNorm in f32.
        y = xq + attn
        mean = jnp.mean(y, axis=-1, keepdims=True)
        var = jnp.mean((y - mean) ** 2, axis=-1, keepdims=True)
        return (y - mean) * jax.lax.rsqrt(var + eps) * g[...] + b[...]

    x = x_ref[0]                      # (S, D)  f32
    m = mem_ref[0]                    # (Sm, D) f32
    x = mha_ln(x, x, s_wq, s_bq, s_wkv, s_bkv, s_wo, s_bo, ln1_g, ln1_b)
    x = mha_ln(x, m, c_wq, c_bq, c_wkv, c_bkv, c_wo, c_bo, ln2_g, ln2_b)
    out_ref[0] = x


def ffn_block_kernel(x_ref, w1_ref, b1_ref, w2_ref, b2_ref, g_ref, b_ref,
                     out_ref, acc_ref, *, eps=1e-5):
    """Fused {Linear -> ReLU -> Linear + residual + LN} on a row tile, with the
    FFN hidden dim tiled along grid axis 1 (accumulated into VMEM scratch)."""
    f = pl.program_id(1)

    @pl.when(f == 0)
    def _():
        acc_ref[...] = jnp.zeros_like(acc_ref)

    x = x_ref[...]                                                # (rows, D) f32
    h = jnp.dot(x.astype(jnp.bfloat16), w1_ref[...],
                preferred_element_type=jnp.float32) + b1_ref[...]
    h = jnp.maximum(h, 0.0)
    acc_ref[...] += jnp.dot(h.astype(jnp.bfloat16), w2_ref[...],
                            preferred_element_type=jnp.float32)

    @pl.when(f == pl.num_programs(1) - 1)
    def _():
        y = x + acc_ref[...] + b2_ref[...]
        mean = jnp.mean(y, axis=-1, keepdims=True)
        var = jnp.mean((y - mean) ** 2, axis=-1, keepdims=True)
        out_ref[...] = (y - mean) * jax.lax.rsqrt(var + eps) * g_ref[...] + b_ref[...]


def final_head_kernel(x_ref, g_ref, b_ref, w_ref, bo_ref, out_ref, *, eps=1e-5):
    """Fused {final LayerNorm + vocab projection} on a (row tile, vocab tile)
    block.  The cheap LN is recomputed per vocab tile."""
    x = x_ref[...]                                                # (rows, D) f32
    mean = jnp.mean(x, axis=-1, keepdims=True)
    var = jnp.mean((x - mean) ** 2, axis=-1, keepdims=True)
    xn = (x - mean) * jax.lax.rsqrt(var + eps) * g_ref[...] + b_ref[...]
    out_ref[...] = jnp.dot(xn.astype(jnp.bfloat16), w_ref[...],
                           preferred_element_type=jnp.float32) + bo_ref[...]


# ----------------------------------------------------------------------------
# pallas_call wrappers
# ----------------------------------------------------------------------------

def layer_attn_block(x, memory, sp, ln1_g, ln1_b, cp, ln2_g, ln2_b, num_heads):
    B, S, D = x.shape
    Sm = memory.shape[1]
    act = lambda s_: pl.BlockSpec((1, s_, D), lambda b: (b, 0, 0))
    w = lambda shape: _const_spec(shape, 1)
    return pl.pallas_call(
        functools.partial(layer_attn_kernel, num_heads=num_heads),
        out_shape=jax.ShapeDtypeStruct((B, S, D), jnp.float32),
        grid=(B,),
        in_specs=[act(S), act(Sm),
                  w((D, D)), w((1, D)), w((D, 2 * D)), w((1, 2 * D)),
                  w((D, D)), w((1, D)), w((1, D)), w((1, D)),
                  w((D, D)), w((1, D)), w((D, 2 * D)), w((1, 2 * D)),
                  w((D, D)), w((1, D)), w((1, D)), w((1, D))],
        out_specs=act(S),
        compiler_params=pltpu.CompilerParams(
            dimension_semantics=("parallel",),
            vmem_limit_bytes=_VMEM_LIMIT),
    )(x, memory,
      sp["wq"], sp["bq"], sp["wkv"], sp["bkv"], sp["wo"], sp["bo"], ln1_g, ln1_b,
      cp["wq"], cp["bq"], cp["wkv"], cp["bkv"], cp["wo"], cp["bo"], ln2_g, ln2_b)


def ffn_block(x, fp, ln_g, ln_b):
    B, S, D = x.shape
    F = fp["w1"].shape[1]
    n = B * S
    rt = _row_tile(n)
    tf = _col_tile(F)
    out = pl.pallas_call(
        ffn_block_kernel,
        out_shape=jax.ShapeDtypeStruct((n, D), jnp.float32),
        grid=(n // rt, F // tf),
        in_specs=[pl.BlockSpec((rt, D), lambda i, f: (i, 0)),
                  pl.BlockSpec((D, tf), lambda i, f: (0, f)),
                  pl.BlockSpec((1, tf), lambda i, f: (0, f)),
                  pl.BlockSpec((tf, D), lambda i, f: (f, 0)),
                  _const_spec((1, D), 2),    # b2
                  _const_spec((1, D), 2),    # LN gamma
                  _const_spec((1, D), 2)],   # LN beta
        out_specs=pl.BlockSpec((rt, D), lambda i, f: (i, 0)),
        scratch_shapes=[pltpu.VMEM((rt, D), jnp.float32)],
        compiler_params=pltpu.CompilerParams(
            dimension_semantics=("parallel", "arbitrary"),
            vmem_limit_bytes=_VMEM_LIMIT),
    )(x.reshape(n, D), fp["w1"], fp["b1"], fp["w2"], fp["b2"], ln_g, ln_b)
    return out.reshape(B, S, D)


def final_head(x, g, b, w, bo):
    B, S, D = x.shape
    V = w.shape[1]
    n = B * S
    rt = _row_tile(n)
    tv = _col_tile(V)
    out = pl.pallas_call(
        final_head_kernel,
        out_shape=jax.ShapeDtypeStruct((n, V), jnp.float32),
        grid=(n // rt, V // tv),
        in_specs=[pl.BlockSpec((rt, D), lambda i, j: (i, 0)),
                  _const_spec((1, D), 2),
                  _const_spec((1, D), 2),
                  pl.BlockSpec((D, tv), lambda i, j: (0, j)),
                  pl.BlockSpec((1, tv), lambda i, j: (0, j))],
        out_specs=pl.BlockSpec((rt, tv), lambda i, j: (i, j)),
        compiler_params=pltpu.CompilerParams(
            dimension_semantics=("parallel", "parallel"),
            vmem_limit_bytes=_VMEM_LIMIT),
    )(x.reshape(n, D), g, b, w, bo)
    return out.reshape(B, S, V)


# ----------------------------------------------------------------------------
# Decoder forward (glue: embedding gather + layer stacking)
# ----------------------------------------------------------------------------

@functools.partial(jax.jit, static_argnums=(3,))
def decoder_forward(tgt_ids, memory, packed, num_heads):
    S = tgt_ids.shape[1]
    x = packed["embed"][tgt_ids] + packed["pos"][:, :S, :]        # (B, S, D)
    for lp in packed["layers"]:
        x = layer_attn_block(x, memory,
                             lp["self_attn"], lp["ln1_g"], lp["ln1_b"],
                             lp["cross_attn"], lp["ln2_g"], lp["ln2_b"],
                             num_heads)
        x = ffn_block(x, lp["ffn"], lp["ln3_g"], lp["ln3_b"])
    return final_head(x, packed["norm_g"], packed["norm_b"],
                      packed["out_w"], packed["out_b"])


def pack_params(params, num_heads):
    """Host-side packing: fold 1/sqrt(head_dim) into wq/bq, concatenate K/V
    projections into one (D, 2D) matrix, and pre-cast matmul weights to bf16
    (biases / LN params stay f32)."""
    D = params["embed"].shape[1]
    scale = 1.0 / float(D // num_heads) ** 0.5

    def pack_attn(p):
        return dict(
            wq=(p["wq"] * scale).astype(jnp.bfloat16),
            bq=p["bq"] * scale,
            wkv=jnp.concatenate([p["wk"], p["wv"]], axis=1).astype(jnp.bfloat16),
            bkv=jnp.concatenate([p["bk"], p["bv"]], axis=1),
            wo=p["wo"].astype(jnp.bfloat16),
            bo=p["bo"])

    layers = []
    for lp in params["layers"]:
        layers.append(dict(
            self_attn=pack_attn(lp["self_attn"]),
            cross_attn=pack_attn(lp["cross_attn"]),
            ffn=dict(w1=lp["ffn"]["w1"].astype(jnp.bfloat16), b1=lp["ffn"]["b1"],
                     w2=lp["ffn"]["w2"].astype(jnp.bfloat16), b2=lp["ffn"]["b2"]),
            ln1_g=lp["ln1_g"], ln1_b=lp["ln1_b"],
            ln2_g=lp["ln2_g"], ln2_b=lp["ln2_b"],
            ln3_g=lp["ln3_g"], ln3_b=lp["ln3_b"]))
    return dict(embed=params["embed"], pos=params["pos"], layers=layers,
                norm_g=params["norm_g"], norm_b=params["norm_b"],
                out_w=params["out_w"].astype(jnp.bfloat16), out_b=params["out_b"])


# ----------------------------------------------------------------------------
# Pure-JAX f32 reference (correctness sanity check)
# ----------------------------------------------------------------------------

def _ref_mha(xq, xkv, p, num_heads):
    B, Sq, D = xq.shape
    hd = D // num_heads
    q = xq @ p["wq"] + p["bq"]
    k = xkv @ p["wk"] + p["bk"]
    v = xkv @ p["wv"] + p["bv"]
    q = q.reshape(B, Sq, num_heads, hd).transpose(0, 2, 1, 3)
    k = k.reshape(B, -1, num_heads, hd).transpose(0, 2, 1, 3)
    v = v.reshape(B, -1, num_heads, hd).transpose(0, 2, 1, 3)
    s = jnp.einsum("bhqd,bhkd->bhqk", q, k) / hd ** 0.5
    a = jax.nn.softmax(s, axis=-1)
    c = jnp.einsum("bhqk,bhkd->bhqd", a, v).transpose(0, 2, 1, 3).reshape(B, Sq, D)
    return c @ p["wo"] + p["bo"]


def _ref_ln(x, g, b, eps=1e-5):
    m = x.mean(-1, keepdims=True)
    v = ((x - m) ** 2).mean(-1, keepdims=True)
    return (x - m) / jnp.sqrt(v + eps) * g + b


def ref_decoder(tgt_ids, memory, params, num_heads):
    S = tgt_ids.shape[1]
    x = params["embed"][tgt_ids] + params["pos"][:, :S, :]
    for lp in params["layers"]:
        x = _ref_ln(x + _ref_mha(x, x, lp["self_attn"], num_heads),
                    lp["ln1_g"], lp["ln1_b"])
        x = _ref_ln(x + _ref_mha(x, memory, lp["cross_attn"], num_heads),
                    lp["ln2_g"], lp["ln2_b"])
        h = jnp.maximum(x @ lp["ffn"]["w1"] + lp["ffn"]["b1"], 0.0)
        x = _ref_ln(x + (h @ lp["ffn"]["w2"] + lp["ffn"]["b2"]),
                    lp["ln3_g"], lp["ln3_b"])
    x = _ref_ln(x, params["norm_g"], params["norm_b"])
    return x @ params["out_w"] + params["out_b"]


# ----------------------------------------------------------------------------
# Deterministic parameter init (PyTorch-style layout, packed afterwards)
# ----------------------------------------------------------------------------

def init_params(key, vocab, D, num_layers, ff_dim, max_seq):
    ks = iter(jax.random.split(key, 8 + num_layers * 32))

    def dense(din, dout, scale=0.05):
        w = scale * jax.random.normal(next(ks), (din, dout), jnp.float32)
        b = scale * jax.random.normal(next(ks), (1, dout), jnp.float32)
        return w, b

    def attn_params():
        p = {}
        for name in ("q", "k", "v", "o"):
            w, b = dense(D, D)
            p[f"w{name}"], p[f"b{name}"] = w, b
        return p

    layers = []
    for _ in range(num_layers):
        w1, b1 = dense(D, ff_dim)
        w2, b2 = dense(ff_dim, D)
        layers.append(dict(
            self_attn=attn_params(),
            cross_attn=attn_params(),
            ffn=dict(w1=w1, b1=b1, w2=w2, b2=b2),
            ln1_g=jnp.ones((1, D), jnp.float32), ln1_b=jnp.zeros((1, D), jnp.float32),
            ln2_g=jnp.ones((1, D), jnp.float32), ln2_b=jnp.zeros((1, D), jnp.float32),
            ln3_g=jnp.ones((1, D), jnp.float32), ln3_b=jnp.zeros((1, D), jnp.float32),
        ))

    out_w, out_b = dense(D, vocab)
    return dict(
        embed=0.05 * jax.random.normal(next(ks), (vocab, D), jnp.float32),
        pos=0.05 * jax.random.normal(next(ks), (1, max_seq, D), jnp.float32),
        layers=layers,
        norm_g=jnp.ones((1, D), jnp.float32), norm_b=jnp.zeros((1, D), jnp.float32),
        out_w=out_w, out_b=out_b,
    )


# ----------------------------------------------------------------------------

if __name__ == "__main__":
    VOCAB, D, LAYERS, HEADS, FF, MAX_SEQ = 32, 32, 2, 4, 64, 16
    B, S_TGT, S_MEM = 2, 8, 8
    assert D % HEADS == 0

    key = jax.random.PRNGKey(0)
    k_par, k_ids, k_mem = jax.random.split(key, 3)

    params = init_params(k_par, VOCAB, D, LAYERS, FF, MAX_SEQ)
    packed = pack_params(params, HEADS)
    tgt_ids = jax.random.randint(k_ids, (B, S_TGT), 0, VOCAB)
    memory = jax.random.normal(k_mem, (B, S_MEM, D), jnp.float32)

    logits = decoder_forward(tgt_ids, memory, packed, HEADS)
    logits = jax.block_until_ready(logits)

    ref = ref_decoder(tgt_ids, memory, params, HEADS)
    assert logits.shape == (B, S_TGT, VOCAB)
    assert bool(jnp.all(jnp.isfinite(logits)))
    # bf16 MXU operands (f32 accumulation, f32 residual/LN path) => compare
    # against the f32 reference with a bf16-aware tolerance.
    assert bool(jnp.allclose(logits, ref, rtol=2e-2, atol=2e-2))

    print("KERNEL_OK")
</pallas_src>

<mosaic_0001>
module attributes {stable_mosaic.version = 11 : i64} {
  func.func @layer_attn_kernel(%arg0: i32, %arg1: memref<1x8x32xf32, #tpu.memory_space<vmem>>, %arg2: memref<1x8x32xf32, #tpu.memory_space<vmem>>, %arg3: memref<32x32xbf16, #tpu.memory_space<vmem>>, %arg4: memref<1x32xf32, #tpu.memory_space<vmem>>, %arg5: memref<32x64xbf16, #tpu.memory_space<vmem>>, %arg6: memref<1x64xf32, #tpu.memory_space<vmem>>, %arg7: memref<32x32xbf16, #tpu.memory_space<vmem>>, %arg8: memref<1x32xf32, #tpu.memory_space<vmem>>, %arg9: memref<1x32xf32, #tpu.memory_space<vmem>>, %arg10: memref<1x32xf32, #tpu.memory_space<vmem>>, %arg11: memref<32x32xbf16, #tpu.memory_space<vmem>>, %arg12: memref<1x32xf32, #tpu.memory_space<vmem>>, %arg13: memref<32x64xbf16, #tpu.memory_space<vmem>>, %arg14: memref<1x64xf32, #tpu.memory_space<vmem>>, %arg15: memref<32x32xbf16, #tpu.memory_space<vmem>>, %arg16: memref<1x32xf32, #tpu.memory_space<vmem>>, %arg17: memref<1x32xf32, #tpu.memory_space<vmem>>, %arg18: memref<1x32xf32, #tpu.memory_space<vmem>>, %arg19: memref<1x8x32xf32, #tpu.memory_space<vmem>>) attributes {dimension_semantics = [#tpu.dimension_semantics<parallel>], iteration_bounds = array<i64: 2>, scalar_prefetch = 0 : i64, scratch_operands = 0 : i64, tpu.core_type = #tpu.core_type<tc>, window_params = [{transform_indices = @transform_0, window_bounds = array<i64: 1, 8, 32>}, {transform_indices = @transform_1, window_bounds = array<i64: 1, 8, 32>}, {pipeline_mode = #tpu.pipeline_mode<synchronous>, transform_indices = @transform_2, window_bounds = array<i64: 32, 32>}, {pipeline_mode = #tpu.pipeline_mode<synchronous>, transform_indices = @transform_3, window_bounds = array<i64: 1, 32>}, {pipeline_mode = #tpu.pipeline_mode<synchronous>, transform_indices = @transform_4, window_bounds = array<i64: 32, 64>}, {pipeline_mode = #tpu.pipeline_mode<synchronous>, transform_indices = @transform_5, window_bounds = array<i64: 1, 64>}, {pipeline_mode = #tpu.pipeline_mode<synchronous>, transform_indices = @transform_6, window_bounds = array<i64: 32, 32>}, {pipeline_mode = #tpu.pipeline_mode<synchronous>, transform_indices = @transform_7, window_bounds = array<i64: 1, 32>}, {pipeline_mode = #tpu.pipeline_mode<synchronous>, transform_indices = @transform_8, window_bounds = array<i64: 1, 32>}, {pipeline_mode = #tpu.pipeline_mode<synchronous>, transform_indices = @transform_9, window_bounds = array<i64: 1, 32>}, {pipeline_mode = #tpu.pipeline_mode<synchronous>, transform_indices = @transform_10, window_bounds = array<i64: 32, 32>}, {pipeline_mode = #tpu.pipeline_mode<synchronous>, transform_indices = @transform_11, window_bounds = array<i64: 1, 32>}, {pipeline_mode = #tpu.pipeline_mode<synchronous>, transform_indices = @transform_12, window_bounds = array<i64: 32, 64>}, {pipeline_mode = #tpu.pipeline_mode<synchronous>, transform_indices = @transform_13, window_bounds = array<i64: 1, 64>}, {pipeline_mode = #tpu.pipeline_mode<synchronous>, transform_indices = @transform_14, window_bounds = array<i64: 32, 32>}, {pipeline_mode = #tpu.pipeline_mode<synchronous>, transform_indices = @transform_15, window_bounds = array<i64: 1, 32>}, {pipeline_mode = #tpu.pipeline_mode<synchronous>, transform_indices = @transform_16, window_bounds = array<i64: 1, 32>}, {pipeline_mode = #tpu.pipeline_mode<synchronous>, transform_indices = @transform_17, window_bounds = array<i64: 1, 32>}, {transform_indices = @transform_18, window_bounds = array<i64: 1, 8, 32>}]} {
    %c0 = arith.constant 0 : index
    %c0_0 = arith.constant 0 : index
    %c0_1 = arith.constant 0 : index
    %0 = vector.load %arg1[%c0, %c0_0, %c0_1] : memref<1x8x32xf32, #tpu.memory_space<vmem>>, vector<1x8x32xf32>
    %1 = vector.shape_cast %0 : vector<1x8x32xf32> to vector<8x32xf32>
    %c0_2 = arith.constant 0 : index
    %c0_3 = arith.constant 0 : index
    %c0_4 = arith.constant 0 : index
    %2 = vector.load %arg2[%c0_2, %c0_3, %c0_4] : memref<1x8x32xf32, #tpu.memory_space<vmem>>, vector<1x8x32xf32>
    %3 = vector.shape_cast %2 : vector<1x8x32xf32> to vector<8x32xf32>
    %4 = arith.truncf %1 : vector<8x32xf32> to vector<8x32xbf16>
    %5 = arith.truncf %1 : vector<8x32xf32> to vector<8x32xbf16>
    %c0_5 = arith.constant 0 : index
    %c0_6 = arith.constant 0 : index
    %6 = vector.load %arg3[%c0_5, %c0_6] : memref<32x32xbf16, #tpu.memory_space<vmem>>, vector<32x32xbf16>
    %cst = arith.constant dense<0.000000e+00> : vector<8x32xf32>
    %7 = tpu.matmul %4, %6, %cst {dimension_numbers = #tpu.dot_dimension_numbers<[1], [0], [0], [1], [0, 0, 1, 1], [], []>} : vector<8x32xbf16>, vector<32x32xbf16>, vector<8x32xf32> -> vector<8x32xf32>
    %c0_7 = arith.constant 0 : index
    %c0_8 = arith.constant 0 : index
    %8 = vector.load %arg4[%c0_7, %c0_8] : memref<1x32xf32, #tpu.memory_space<vmem>>, vector<1x32xf32>
    %9 = vector.broadcast %8 : vector<1x32xf32> to vector<8x32xf32>
    %10 = arith.addf %7, %9 : vector<8x32xf32>
    %c0_9 = arith.constant 0 : index
    %c0_10 = arith.constant 0 : index
    %11 = vector.load %arg5[%c0_9, %c0_10] : memref<32x64xbf16, #tpu.memory_space<vmem>>, vector<32x64xbf16>
    %cst_11 = arith.constant dense<0.000000e+00> : vector<8x64xf32>
    %12 = tpu.matmul %5, %11, %cst_11 {dimension_numbers = #tpu.dot_dimension_numbers<[1], [0], [0], [1], [0, 0, 1, 1], [], []>} : vector<8x32xbf16>, vector<32x64xbf16>, vector<8x64xf32> -> vector<8x64xf32>
    %c0_12 = arith.constant 0 : index
    %c0_13 = arith.constant 0 : index
    %13 = vector.load %arg6[%c0_12, %c0_13] : memref<1x64xf32, #tpu.memory_space<vmem>>, vector<1x64xf32>
    %14 = vector.broadcast %13 : vector<1x64xf32> to vector<8x64xf32>
    %15 = arith.addf %12, %14 : vector<8x64xf32>
    %16 = vector.extract_strided_slice %15 {offsets = [0, 0], sizes = [8, 32], strides = [1, 1]} : vector<8x64xf32> to vector<8x32xf32>
    %17 = vector.extract_strided_slice %15 {offsets = [0, 32], sizes = [8, 32], strides = [1, 1]} : vector<8x64xf32> to vector<8x32xf32>
    %18 = vector.shape_cast %10 : vector<8x32xf32> to vector<8x4x8xf32>
    %19 = tpu.transpose %18, [1, 0, 2] : vector<8x4x8xf32> -> vector<4x8x8xf32>
    %20 = arith.truncf %19 : vector<4x8x8xf32> to vector<4x8x8xbf16>
    %21 = vector.shape_cast %16 : vector<8x32xf32> to vector<8x4x8xf32>
    %22 = tpu.transpose %21, [1, 0, 2] : vector<8x4x8xf32> -> vector<4x8x8xf32>
    %23 = arith.truncf %22 : vector<4x8x8xf32> to vector<4x8x8xbf16>
    %24 = vector.shape_cast %17 : vector<8x32xf32> to vector<8x4x8xf32>
    %25 = tpu.transpose %24, [1, 0, 2] : vector<8x4x8xf32> -> vector<4x8x8xf32>
    %26 = arith.truncf %25 : vector<4x8x8xf32> to vector<4x8x8xbf16>
    "tpu.trace_start"() <{level = 10 : i32, message = "hqd,hkd->hqk"}> : () -> ()
    %cst_14 = arith.constant dense<0.000000e+00> : vector<4x8x8xf32>
    %27 = tpu.matmul %20, %23, %cst_14 {dimension_numbers = #tpu.dot_dimension_numbers<[2], [2], [1], [1], [0, 0, 0, 1, 1, 1], [0], [0]>} : vector<4x8x8xbf16>, vector<4x8x8xbf16>, vector<4x8x8xf32> -> vector<4x8x8xf32>
    "tpu.trace_stop"() : () -> ()
    %cst_15 = arith.constant dense<0xFF800000> : vector<4x8xf32>
    %28 = vector.multi_reduction <maximumf>, %27, %cst_15 [2] : vector<4x8x8xf32> to vector<4x8xf32>
    %29 = vector.shape_cast %28 : vector<4x8xf32> to vector<4x8x1xf32>
    %30 = vector.broadcast %29 : vector<4x8x1xf32> to vector<4x8x8xf32>
    %31 = arith.subf %27, %30 : vector<4x8x8xf32>
    %32 = math.exp %31 : vector<4x8x8xf32>
    %cst_16 = arith.constant dense<0.000000e+00> : vector<4x8xf32>
    %33 = vector.multi_reduction <add>, %32, %cst_16 [2] : vector<4x8x8xf32> to vector<4x8xf32>
    %34 = vector.shape_cast %33 : vector<4x8xf32> to vector<4x8x1xf32>
    %35 = tpu.reciprocal %34 {approx = true} : vector<4x8x1xf32> -> vector<4x8x1xf32>
    %36 = vector.broadcast %35 : vector<4x8x1xf32> to vector<4x8x8xf32>
    %37 = arith.mulf %32, %36 : vector<4x8x8xf32>
    %38 = arith.truncf %37 : vector<4x8x8xf32> to vector<4x8x8xbf16>
    "tpu.trace_start"() <{level = 10 : i32, message = "hqk,hkd->hqd"}> : () -> ()
    %cst_17 = arith.constant dense<0.000000e+00> : vector<4x8x8xf32>
    %39 = tpu.matmul %38, %26, %cst_17 {dimension_numbers = #tpu.dot_dimension_numbers<[2], [1], [1], [2], [0, 0, 0, 1, 1, 2], [0], [0]>} : vector<4x8x8xbf16>, vector<4x8x8xbf16>, vector<4x8x8xf32> -> vector<4x8x8xf32>
    "tpu.trace_stop"() : () -> ()
    %40 = tpu.transpose %39, [1, 0, 2] : vector<4x8x8xf32> -> vector<8x4x8xf32>
    %41 = vector.shape_cast %40 : vector<8x4x8xf32> to vector<8x32xf32>
    %42 = arith.truncf %41 : vector<8x32xf32> to vector<8x32xbf16>
    %c0_18 = arith.constant 0 : index
    %c0_19 = arith.constant 0 : index
    %43 = vector.load %arg7[%c0_18, %c0_19] : memref<32x32xbf16, #tpu.memory_space<vmem>>, vector<32x32xbf16>
    %cst_20 = arith.constant dense<0.000000e+00> : vector<8x32xf32>
    %44 = tpu.matmul %42, %43, %cst_20 {dimension_numbers = #tpu.dot_dimension_numbers<[1], [0], [0], [1], [0, 0, 1, 1], [], []>} : vector<8x32xbf16>, vector<32x32xbf16>, vector<8x32xf32> -> vector<8x32xf32>
    %c0_21 = arith.constant 0 : index
    %c0_22 = arith.constant 0 : index
    %45 = vector.load %arg8[%c0_21, %c0_22] : memref<1x32xf32, #tpu.memory_space<vmem>>, vector<1x32xf32>
    %46 = vector.broadcast %45 : vector<1x32xf32> to vector<8x32xf32>
    %47 = arith.addf %44, %46 : vector<8x32xf32>
    %48 = arith.addf %1, %47 : vector<8x32xf32>
    %cst_23 = arith.constant dense<0.000000e+00> : vector<8xf32>
    %49 = vector.multi_reduction <add>, %48, %cst_23 [1] : vector<8x32xf32> to vector<8xf32>
    %50 = vector.shape_cast %49 : vector<8xf32> to vector<8x1xf32>
    %cst_24 = arith.constant 3.200000e+01 : f32
    %51 = vector.broadcast %cst_24 : f32 to vector<8x1xf32>
    %52 = arith.divf %50, %51 : vector<8x1xf32>
    %53 = vector.broadcast %52 : vector<8x1xf32> to vector<8x32xf32>
    %54 = arith.subf %48, %53 : vector<8x32xf32>
    %55 = arith.mulf %54, %54 : vector<8x32xf32>
    %cst_25 = arith.constant dense<0.000000e+00> : vector<8xf32>
    %56 = vector.multi_reduction <add>, %55, %cst_25 [1] : vector<8x32xf32> to vector<8xf32>
    %57 = vector.shape_cast %56 : vector<8xf32> to vector<8x1xf32>
    %cst_26 = arith.constant 3.200000e+01 : f32
    %58 = vector.broadcast %cst_26 : f32 to vector<8x1xf32>
    %59 = arith.divf %57, %58 : vector<8x1xf32>
    %60 = vector.broadcast %52 : vector<8x1xf32> to vector<8x32xf32>
    %61 = arith.subf %48, %60 : vector<8x32xf32>
    %cst_27 = arith.constant 9.99999974E-6 : f32
    %62 = vector.broadcast %cst_27 : f32 to vector<8x1xf32>
    %63 = arith.addf %59, %62 : vector<8x1xf32>
    %64 = math.rsqrt %63 : vector<8x1xf32>
    %65 = vector.broadcast %64 : vector<8x1xf32> to vector<8x32xf32>
    %66 = arith.mulf %61, %65 : vector<8x32xf32>
    %c0_28 = arith.constant 0 : index
    %c0_29 = arith.constant 0 : index
    %67 = vector.load %arg9[%c0_28, %c0_29] : memref<1x32xf32, #tpu.memory_space<vmem>>, vector<1x32xf32>
    %68 = vector.broadcast %67 : vector<1x32xf32> to vector<8x32xf32>
    %69 = arith.mulf %66, %68 : vector<8x32xf32>
    %c0_30 = arith.constant 0 : index
    %c0_31 = arith.constant 0 : index
    %70 = vector.load %arg10[%c0_30, %c0_31] : memref<1x32xf32, #tpu.memory_space<vmem>>, vector<1x32xf32>
    %71 = vector.broadcast %70 : vector<1x32xf32> to vector<8x32xf32>
    %72 = arith.addf %69, %71 : vector<8x32xf32>
    %73 = arith.truncf %72 : vector<8x32xf32> to vector<8x32xbf16>
    %74 = arith.truncf %3 : vector<8x32xf32> to vector<8x32xbf16>
    %c0_32 = arith.constant 0 : index
    %c0_33 = arith.constant 0 : index
    %75 = vector.load %arg11[%c0_32, %c0_33] : memref<32x32xbf16, #tpu.memory_space<vmem>>, vector<32x32xbf16>
    %cst_34 = arith.constant dense<0.000000e+00> : vector<8x32xf32>
    %76 = tpu.matmul %73, %75, %cst_34 {dimension_numbers = #tpu.dot_dimension_numbers<[1], [0], [0], [1], [0, 0, 1, 1], [], []>} : vector<8x32xbf16>, vector<32x32xbf16>, vector<8x32xf32> -> vector<8x32xf32>
    %c0_35 = arith.constant 0 : index
    %c0_36 = arith.constant 0 : index
    %77 = vector.load %arg12[%c0_35, %c0_36] : memref<1x32xf32, #tpu.memory_space<vmem>>, vector<1x32xf32>
    %78 = vector.broadcast %77 : vector<1x32xf32> to vector<8x32xf32>
    %79 = arith.addf %76, %78 : vector<8x32xf32>
    %c0_37 = arith.constant 0 : index
    %c0_38 = arith.constant 0 : index
    %80 = vector.load %arg13[%c0_37, %c0_38] : memref<32x64xbf16, #tpu.memory_space<vmem>>, vector<32x64xbf16>
    %cst_39 = arith.constant dense<0.000000e+00> : vector<8x64xf32>
    %81 = tpu.matmul %74, %80, %cst_39 {dimension_numbers = #tpu.dot_dimension_numbers<[1], [0], [0], [1], [0, 0, 1, 1], [], []>} : vector<8x32xbf16>, vector<32x64xbf16>, vector<8x64xf32> -> vector<8x64xf32>
    %c0_40 = arith.constant 0 : index
    %c0_41 = arith.constant 0 : index
    %82 = vector.load %arg14[%c0_40, %c0_41] : memref<1x64xf32, #tpu.memory_space<vmem>>, vector<1x64xf32>
    %83 = vector.broadcast %82 : vector<1x64xf32> to vector<8x64xf32>
    %84 = arith.addf %81, %83 : vector<8x64xf32>
    %85 = vector.extract_strided_slice %84 {offsets = [0, 0], sizes = [8, 32], strides = [1, 1]} : vector<8x64xf32> to vector<8x32xf32>
    %86 = vector.extract_strided_slice %84 {offsets = [0, 32], sizes = [8, 32], strides = [1, 1]} : vector<8x64xf32> to vector<8x32xf32>
    %87 = vector.shape_cast %79 : vector<8x32xf32> to vector<8x4x8xf32>
    %88 = tpu.transpose %87, [1, 0, 2] : vector<8x4x8xf32> -> vector<4x8x8xf32>
    %89 = arith.truncf %88 : vector<4x8x8xf32> to vector<4x8x8xbf16>
    %90 = vector.shape_cast %85 : vector<8x32xf32> to vector<8x4x8xf32>
    %91 = tpu.transpose %90, [1, 0, 2] : vector<8x4x8xf32> -> vector<4x8x8xf32>
    %92 = arith.truncf %91 : vector<4x8x8xf32> to vector<4x8x8xbf16>
    %93 = vector.shape_cast %86 : vector<8x32xf32> to vector<8x4x8xf32>
    %94 = tpu.transpose %93, [1, 0, 2] : vector<8x4x8xf32> -> vector<4x8x8xf32>
    %95 = arith.truncf %94 : vector<4x8x8xf32> to vector<4x8x8xbf16>
    "tpu.trace_start"() <{level = 10 : i32, message = "hqd,hkd->hqk"}> : () -> ()
    %cst_42 = arith.constant dense<0.000000e+00> : vector<4x8x8xf32>
    %96 = tpu.matmul %89, %92, %cst_42 {dimension_numbers = #tpu.dot_dimension_numbers<[2], [2], [1], [1], [0, 0, 0, 1, 1, 1], [0], [0]>} : vector<4x8x8xbf16>, vector<4x8x8xbf16>, vector<4x8x8xf32> -> vector<4x8x8xf32>
    "tpu.trace_stop"() : () -> ()
    %cst_43 = arith.constant dense<0xFF800000> : vector<4x8xf32>
    %97 = vector.multi_reduction <maximumf>, %96, %cst_43 [2] : vector<4x8x8xf32> to vector<4x8xf32>
    %98 = vector.shape_cast %97 : vector<4x8xf32> to vector<4x8x1xf32>
    %99 = vector.broadcast %98 : vector<4x8x1xf32> to vector<4x8x8xf32>
    %100 = arith.subf %96, %99 : vector<4x8x8xf32>
    %101 = math.exp %100 : vector<4x8x8xf32>
    %cst_44 = arith.constant dense<0.000000e+00> : vector<4x8xf32>
    %102 = vector.multi_reduction <add>, %101, %cst_44 [2] : vector<4x8x8xf32> to vector<4x8xf32>
    %103 = vector.shape_cast %102 : vector<4x8xf32> to vector<4x8x1xf32>
    %104 = tpu.reciprocal %103 {approx = true} : vector<4x8x1xf32> -> vector<4x8x1xf32>
    %105 = vector.broadcast %104 : vector<4x8x1xf32> to vector<4x8x8xf32>
    %106 = arith.mulf %101, %105 : vector<4x8x8xf32>
    %107 = arith.truncf %106 : vector<4x8x8xf32> to vector<4x8x8xbf16>
    "tpu.trace_start"() <{level = 10 : i32, message = "hqk,hkd->hqd"}> : () -> ()
    %cst_45 = arith.constant dense<0.000000e+00> : vector<4x8x8xf32>
    %108 = tpu.matmul %107, %95, %cst_45 {dimension_numbers = #tpu.dot_dimension_numbers<[2], [1], [1], [2], [0, 0, 0, 1, 1, 2], [0], [0]>} : vector<4x8x8xbf16>, vector<4x8x8xbf16>, vector<4x8x8xf32> -> vector<4x8x8xf32>
    "tpu.trace_stop"() : () -> ()
    %109 = tpu.transpose %108, [1, 0, 2] : vector<4x8x8xf32> -> vector<8x4x8xf32>
    %110 = vector.shape_cast %109 : vector<8x4x8xf32> to vector<8x32xf32>
    %111 = arith.truncf %110 : vector<8x32xf32> to vector<8x32xbf16>
    %c0_46 = arith.constant 0 : index
    %c0_47 = arith.constant 0 : index
    %112 = vector.load %arg15[%c0_46, %c0_47] : memref<32x32xbf16, #tpu.memory_space<vmem>>, vector<32x32xbf16>
    %cst_48 = arith.constant dense<0.000000e+00> : vector<8x32xf32>
    %113 = tpu.matmul %111, %112, %cst_48 {dimension_numbers = #tpu.dot_dimension_numbers<[1], [0], [0], [1], [0, 0, 1, 1], [], []>} : vector<8x32xbf16>, vector<32x32xbf16>, vector<8x32xf32> -> vector<8x32xf32>
    %c0_49 = arith.constant 0 : index
    %c0_50 = arith.constant 0 : index
    %114 = vector.load %arg16[%c0_49, %c0_50] : memref<1x32xf32, #tpu.memory_space<vmem>>, vector<1x32xf32>
    %115 = vector.broadcast %114 : vector<1x32xf32> to vector<8x32xf32>
    %116 = arith.addf %113, %115 : vector<8x32xf32>
    %117 = arith.addf %72, %116 : vector<8x32xf32>
    %cst_51 = arith.constant dense<0.000000e+00> : vector<8xf32>
    %118 = vector.multi_reduction <add>, %117, %cst_51 [1] : vector<8x32xf32> to vector<8xf32>
    %119 = vector.shape_cast %118 : vector<8xf32> to vector<8x1xf32>
    %cst_52 = arith.constant 3.200000e+01 : f32
    %120 = vector.broadcast %cst_52 : f32 to vector<8x1xf32>
    %121 = arith.divf %119, %120 : vector<8x1xf32>
    %122 = vector.broadcast %121 : vector<8x1xf32> to vector<8x32xf32>
    %123 = arith.subf %117, %122 : vector<8x32xf32>
    %124 = arith.mulf %123, %123 : vector<8x32xf32>
    %cst_53 = arith.constant dense<0.000000e+00> : vector<8xf32>
    %125 = vector.multi_reduction <add>, %124, %cst_53 [1] : vector<8x32xf32> to vector<8xf32>
    %126 = vector.shape_cast %125 : vector<8xf32> to vector<8x1xf32>
    %cst_54 = arith.constant 3.200000e+01 : f32
    %127 = vector.broadcast %cst_54 : f32 to vector<8x1xf32>
    %128 = arith.divf %126, %127 : vector<8x1xf32>
    %129 = vector.broadcast %121 : vector<8x1xf32> to vector<8x32xf32>
    %130 = arith.subf %117, %129 : vector<8x32xf32>
    %cst_55 = arith.constant 9.99999974E-6 : f32
    %131 = vector.broadcast %cst_55 : f32 to vector<8x1xf32>
    %132 = arith.addf %128, %131 : vector<8x1xf32>
    %133 = math.rsqrt %132 : vector<8x1xf32>
    %134 = vector.broadcast %133 : vector<8x1xf32> to vector<8x32xf32>
    %135 = arith.mulf %130, %134 : vector<8x32xf32>
    %c0_56 = arith.constant 0 : index
    %c0_57 = arith.constant 0 : index
    %136 = vector.load %arg17[%c0_56, %c0_57] : memref<1x32xf32, #tpu.memory_space<vmem>>, vector<1x32xf32>
    %137 = vector.broadcast %136 : vector<1x32xf32> to vector<8x32xf32>
    %138 = arith.mulf %135, %137 : vector<8x32xf32>
    %c0_58 = arith.constant 0 : index
    %c0_59 = arith.constant 0 : index
    %139 = vector.load %arg18[%c0_58, %c0_59] : memref<1x32xf32, #tpu.memory_space<vmem>>, vector<1x32xf32>
    %140 = vector.broadcast %139 : vector<1x32xf32> to vector<8x32xf32>
    %141 = arith.addf %138, %140 : vector<8x32xf32>
    %c0_60 = arith.constant 0 : index
    %c0_61 = arith.constant 0 : index
    %c0_62 = arith.constant 0 : index
    %142 = vector.load %arg19[%c0_60, %c0_61, %c0_62] : memref<1x8x32xf32, #tpu.memory_space<vmem>>, vector<1x8x32xf32>
    %143 = vector.shape_cast %142 : vector<1x8x32xf32> to vector<8x32xf32>
    %144 = vector.shape_cast %141 : vector<8x32xf32> to vector<1x8x32xf32>
    tpu.vector_store %arg19[%c0_60, %c0_61, %c0_62], %144 {strides = array<i32>} : memref<1x8x32xf32, #tpu.memory_space<vmem>>, vector<1x8x32xf32>,
    return
  }
  func.func @transform_0(%arg0: i32) -> (i32, i32, i32) {
    %c0_i32 = arith.constant 0 : i32
    %c0_i32_0 = arith.constant 0 : i32
    %c0_i32_1 = arith.constant 0 : i32
    return %arg0, %c0_i32, %c0_i32_0 : i32, i32, i32
  }
  func.func @transform_1(%arg0: i32) -> (i32, i32, i32) {
    %c0_i32 = arith.constant 0 : i32
    %c0_i32_0 = arith.constant 0 : i32
    %c0_i32_1 = arith.constant 0 : i32
    return %arg0, %c0_i32, %c0_i32_0 : i32, i32, i32
  }
  func.func @transform_2(%arg0: i32) -> (i32, i32) {
    %c0_i32 = arith.constant 0 : i32
    %c0_i32_0 = arith.constant 0 : i32
    %c0_i32_1 = arith.constant 0 : i32
    return %c0_i32, %c0_i32_0 : i32, i32
  }
  func.func @transform_3(%arg0: i32) -> (i32, i32) {
    %c0_i32 = arith.constant 0 : i32
    %c0_i32_0 = arith.constant 0 : i32
    %c0_i32_1 = arith.constant 0 : i32
    return %c0_i32, %c0_i32_0 : i32, i32
  }
  func.func @transform_4(%arg0: i32) -> (i32, i32) {
    %c0_i32 = arith.constant 0 : i32
    %c0_i32_0 = arith.constant 0 : i32
    %c0_i32_1 = arith.constant 0 : i32
    return %c0_i32, %c0_i32_0 : i32, i32
  }
  func.func @transform_5(%arg0: i32) -> (i32, i32) {
    %c0_i32 = arith.constant 0 : i32
    %c0_i32_0 = arith.constant 0 : i32
    %c0_i32_1 = arith.constant 0 : i32
    return %c0_i32, %c0_i32_0 : i32, i32
  }
  func.func @transform_6(%arg0: i32) -> (i32, i32) {
    %c0_i32 = arith.constant 0 : i32
    %c0_i32_0 = arith.constant 0 : i32
    %c0_i32_1 = arith.constant 0 : i32
    return %c0_i32, %c0_i32_0 : i32, i32
  }
  func.func @transform_7(%arg0: i32) -> (i32, i32) {
    %c0_i32 = arith.constant 0 : i32
    %c0_i32_0 = arith.constant 0 : i32
    %c0_i32_1 = arith.constant 0 : i32
    return %c0_i32, %c0_i32_0 : i32, i32
  }
  func.func @transform_8(%arg0: i32) -> (i32, i32) {
    %c0_i32 = arith.constant 0 : i32
    %c0_i32_0 = arith.constant 0 : i32
    %c0_i32_1 = arith.constant 0 : i32
    return %c0_i32, %c0_i32_0 : i32, i32
  }
  func.func @transform_9(%arg0: i32) -> (i32, i32) {
    %c0_i32 = arith.constant 0 : i32
    %c0_i32_0 = arith.constant 0 : i32
    %c0_i32_1 = arith.constant 0 : i32
    return %c0_i32, %c0_i32_0 : i32, i32
  }
  func.func @transform_10(%arg0: i32) -> (i32, i32) {
    %c0_i32 = arith.constant 0 : i32
    %c0_i32_0 = arith.constant 0 : i32
    %c0_i32_1 = arith.constant 0 : i32
    return %c0_i32, %c0_i32_0 : i32, i32
  }
  func.func @transform_11(%arg0: i32) -> (i32, i32) {
    %c0_i32 = arith.constant 0 : i32
    %c0_i32_0 = arith.constant 0 : i32
    %c0_i32_1 = arith.constant 0 : i32
    return %c0_i32, %c0_i32_0 : i32, i32
  }
  func.func @transform_12(%arg0: i32) -> (i32, i32) {
    %c0_i32 = arith.constant 0 : i32
    %c0_i32_0 = arith.constant 0 : i32
    %c0_i32_1 = arith.constant 0 : i32
    return %c0_i32, %c0_i32_0 : i32, i32
  }
  func.func @transform_13(%arg0: i32) -> (i32, i32) {
    %c0_i32 = arith.constant 0 : i32
    %c0_i32_0 = arith.constant 0 : i32
    %c0_i32_1 = arith.constant 0 : i32
    return %c0_i32, %c0_i32_0 : i32, i32
  }
  func.func @transform_14(%arg0: i32) -> (i32, i32) {
    %c0_i32 = arith.constant 0 : i32
    %c0_i32_0 = arith.constant 0 : i32
    %c0_i32_1 = arith.constant 0 : i32
    return %c0_i32, %c0_i32_0 : i32, i32
  }
  func.func @transform_15(%arg0: i32) -> (i32, i32) {
    %c0_i32 = arith.constant 0 : i32
    %c0_i32_0 = arith.constant 0 : i32
    %c0_i32_1 = arith.constant 0 : i32
    return %c0_i32, %c0_i32_0 : i32, i32
  }
  func.func @transform_16(%arg0: i32) -> (i32, i32) {
    %c0_i32 = arith.constant 0 : i32
    %c0_i32_0 = arith.constant 0 : i32
    %c0_i32_1 = arith.constant 0 : i32
    return %c0_i32, %c0_i32_0 : i32, i32
  }
  func.func @transform_17(%arg0: i32) -> (i32, i32) {
    %c0_i32 = arith.constant 0 : i32
    %c0_i32_0 = arith.constant 0 : i32
    %c0_i32_1 = arith.constant 0 : i32
    return %c0_i32, %c0_i32_0 : i32, i32
  }
  func.func @transform_18(%arg0: i32) -> (i32, i32, i32) {
    %c0_i32 = arith.constant 0 : i32
    %c0_i32_0 = arith.constant 0 : i32
    %c0_i32_1 = arith.constant 0 : i32
    return %arg0, %c0_i32, %c0_i32_0 : i32, i32, i32
  }
}

module attributes {stable_mosaic.version = 11 : i64} {
  func.func @final_head_kernel(%arg0: i32, %arg1: i32, %arg2: memref<16x32xf32, #tpu.memory_space<vmem>>, %arg3: memref<1x32xf32, #tpu.memory_space<vmem>>, %arg4: memref<1x32xf32, #tpu.memory_space<vmem>>, %arg5: memref<32x32xbf16, #tpu.memory_space<vmem>>, %arg6: memref<1x32xf32, #tpu.memory_space<vmem>>, %arg7: memref<16x32xf32, #tpu.memory_space<vmem>>) attributes {dimension_semantics = [#tpu.dimension_semantics<parallel>, #tpu.dimension_semantics<parallel>], iteration_bounds = array<i64: 1, 1>, scalar_prefetch = 0 : i64, scratch_operands = 0 : i64, tpu.core_type = #tpu.core_type<tc>, window_params = [{transform_indices = @transform_0, window_bounds = array<i64: 16, 32>}, {pipeline_mode = #tpu.pipeline_mode<synchronous>, transform_indices = @transform_1, window_bounds = array<i64: 1, 32>}, {pipeline_mode = #tpu.pipeline_mode<synchronous>, transform_indices = @transform_2, window_bounds = array<i64: 1, 32>}, {transform_indices = @transform_3, window_bounds = array<i64: 32, 32>}, {transform_indices = @transform_4, window_bounds = array<i64: 1, 32>}, {transform_indices = @transform_5, window_bounds = array<i64: 16, 32>}]} {
    %c0 = arith.constant 0 : index
    %c0_0 = arith.constant 0 : index
    %0 = vector.load %arg2[%c0, %c0_0] : memref<16x32xf32, #tpu.memory_space<vmem>>, vector<16x32xf32>
    %cst = arith.constant dense<0.000000e+00> : vector<16xf32>
    %1 = vector.multi_reduction <add>, %0, %cst [1] : vector<16x32xf32> to vector<16xf32>
    %2 = vector.shape_cast %1 : vector<16xf32> to vector<16x1xf32>
    %cst_1 = arith.constant 3.200000e+01 : f32
    %3 = vector.broadcast %cst_1 : f32 to vector<16x1xf32>
    %4 = arith.divf %2, %3 : vector<16x1xf32>
    %5 = vector.broadcast %4 : vector<16x1xf32> to vector<16x32xf32>
    %6 = arith.subf %0, %5 : vector<16x32xf32>
    %7 = arith.mulf %6, %6 : vector<16x32xf32>
    %cst_2 = arith.constant dense<0.000000e+00> : vector<16xf32>
    %8 = vector.multi_reduction <add>, %7, %cst_2 [1] : vector<16x32xf32> to vector<16xf32>
    %9 = vector.shape_cast %8 : vector<16xf32> to vector<16x1xf32>
    %cst_3 = arith.constant 3.200000e+01 : f32
    %10 = vector.broadcast %cst_3 : f32 to vector<16x1xf32>
    %11 = arith.divf %9, %10 : vector<16x1xf32>
    %12 = vector.broadcast %4 : vector<16x1xf32> to vector<16x32xf32>
    %13 = arith.subf %0, %12 : vector<16x32xf32>
    %cst_4 = arith.constant 9.99999974E-6 : f32
    %14 = vector.broadcast %cst_4 : f32 to vector<16x1xf32>
    %15 = arith.addf %11, %14 : vector<16x1xf32>
    %16 = math.rsqrt %15 : vector<16x1xf32>
    %17 = vector.broadcast %16 : vector<16x1xf32> to vector<16x32xf32>
    %18 = arith.mulf %13, %17 : vector<16x32xf32>
    %c0_5 = arith.constant 0 : index
    %c0_6 = arith.constant 0 : index
    %19 = vector.load %arg3[%c0_5, %c0_6] : memref<1x32xf32, #tpu.memory_space<vmem>>, vector<1x32xf32>
    %20 = vector.broadcast %19 : vector<1x32xf32> to vector<16x32xf32>
    %21 = arith.mulf %18, %20 : vector<16x32xf32>
    %c0_7 = arith.constant 0 : index
    %c0_8 = arith.constant 0 : index
    %22 = vector.load %arg4[%c0_7, %c0_8] : memref<1x32xf32, #tpu.memory_space<vmem>>, vector<1x32xf32>
    %23 = vector.broadcast %22 : vector<1x32xf32> to vector<16x32xf32>
    %24 = arith.addf %21, %23 : vector<16x32xf32>
    %25 = arith.truncf %24 : vector<16x32xf32> to vector<16x32xbf16>
    %c0_9 = arith.constant 0 : index
    %c0_10 = arith.constant 0 : index
    %26 = vector.load %arg5[%c0_9, %c0_10] : memref<32x32xbf16, #tpu.memory_space<vmem>>, vector<32x32xbf16>
    %cst_11 = arith.constant dense<0.000000e+00> : vector<16x32xf32>
    %27 = tpu.matmul %25, %26, %cst_11 {dimension_numbers = #tpu.dot_dimension_numbers<[1], [0], [0], [1], [0, 0, 1, 1], [], []>} : vector<16x32xbf16>, vector<32x32xbf16>, vector<16x32xf32> -> vector<16x32xf32>
    %c0_12 = arith.constant 0 : index
    %c0_13 = arith.constant 0 : index
    %28 = vector.load %arg6[%c0_12, %c0_13] : memref<1x32xf32, #tpu.memory_space<vmem>>, vector<1x32xf32>
    %29 = vector.broadcast %28 : vector<1x32xf32> to vector<16x32xf32>
    %30 = arith.addf %27, %29 : vector<16x32xf32>
    %c0_14 = arith.constant 0 : index
    %c0_15 = arith.constant 0 : index
    %31 = vector.load %arg7[%c0_14, %c0_15] : memref<16x32xf32, #tpu.memory_space<vmem>>, vector<16x32xf32>
    tpu.vector_store %arg7[%c0_14, %c0_15], %30 {strides = array<i32>} : memref<16x32xf32, #tpu.memory_space<vmem>>, vector<16x32xf32>,
    return
  }
  func.func @transform_0(%arg0: i32, %arg1: i32) -> (i32, i32) {
    %c0_i32 = arith.constant 0 : i32
    %c0_i32_0 = arith.constant 0 : i32
    return %arg0, %c0_i32 : i32, i32
  }
  func.func @transform_1(%arg0: i32, %arg1: i32) -> (i32, i32) {
    %c0_i32 = arith.constant 0 : i32
    %c0_i32_0 = arith.constant 0 : i32
    %c0_i32_1 = arith.constant 0 : i32
    return %c0_i32, %c0_i32_0 : i32, i32
  }
  func.func @transform_2(%arg0: i32, %arg1: i32) -> (i32, i32) {
    %c0_i32 = arith.constant 0 : i32
    %c0_i32_0 = arith.constant 0 : i32
    %c0_i32_1 = arith.constant 0 : i32
    return %c0_i32, %c0_i32_0 : i32, i32
  }
  func.func @transform_3(%arg0: i32, %arg1: i32) -> (i32, i32) {
    %c0_i32 = arith.constant 0 : i32
    %c0_i32_0 = arith.constant 0 : i32
    return %c0_i32, %arg1 : i32, i32
  }
  func.func @transform_4(%arg0: i32, %arg1: i32) -> (i32, i32) {
    %c0_i32 = arith.constant 0 : i32
    %c0_i32_0 = arith.constant 0 : i32
    return %c0_i32, %arg1 : i32, i32
  }
  func.func @transform_5(%arg0: i32, %arg1: i32) -> (i32, i32) {
    %c0_i32 = arith.constant 0 : i32
    return %arg0, %arg1 : i32, i32
  }
}

module attributes {stable_mosaic.version = 11 : i64} {
  func.func @ffn_block_kernel(%arg0: i32, %arg1: i32, %arg2: memref<16x32xf32, #tpu.memory_space<vmem>>, %arg3: memref<32x64xbf16, #tpu.memory_space<vmem>>, %arg4: memref<1x64xf32, #tpu.memory_space<vmem>>, %arg5: memref<64x32xbf16, #tpu.memory_space<vmem>>, %arg6: memref<1x32xf32, #tpu.memory_space<vmem>>, %arg7: memref<1x32xf32, #tpu.memory_space<vmem>>, %arg8: memref<1x32xf32, #tpu.memory_space<vmem>>, %arg9: memref<16x32xf32, #tpu.memory_space<vmem>>, %arg10: memref<16x32xf32, #tpu.memory_space<vmem>>) attributes {dimension_semantics = [#tpu.dimension_semantics<parallel>, #tpu.dimension_semantics<arbitrary>], iteration_bounds = array<i64: 1, 1>, scalar_prefetch = 0 : i64, scratch_operands = 1 : i64, tpu.core_type = #tpu.core_type<tc>, window_params = [{transform_indices = @transform_0, window_bounds = array<i64: 16, 32>}, {transform_indices = @transform_1, window_bounds = array<i64: 32, 64>}, {transform_indices = @transform_2, window_bounds = array<i64: 1, 64>}, {transform_indices = @transform_3, window_bounds = array<i64: 64, 32>}, {pipeline_mode = #tpu.pipeline_mode<synchronous>, transform_indices = @transform_4, window_bounds = array<i64: 1, 32>}, {pipeline_mode = #tpu.pipeline_mode<synchronous>, transform_indices = @transform_5, window_bounds = array<i64: 1, 32>}, {pipeline_mode = #tpu.pipeline_mode<synchronous>, transform_indices = @transform_6, window_bounds = array<i64: 1, 32>}, {transform_indices = @transform_7, window_bounds = array<i64: 16, 32>}]} {
    %c0_i32 = arith.constant 0 : i32
    %0 = arith.cmpi eq, %arg1, %c0_i32 : i32
    %1 = arith.extui %0 : i1 to i32
    %c0_i32_0 = arith.constant 0 : i32
    %2 = arith.cmpi ne, %1, %c0_i32_0 : i32
    scf.if %2 {
      %cst_16 = arith.constant 0.000000e+00 : f32
      %21 = vector.broadcast %cst_16 : f32 to vector<16x32xf32>
      %c0_17 = arith.constant 0 : index
      %c0_18 = arith.constant 0 : index
      %22 = vector.load %arg10[%c0_17, %c0_18] : memref<16x32xf32, #tpu.memory_space<vmem>>, vector<16x32xf32>
      tpu.vector_store %arg10[%c0_17, %c0_18], %21 {strides = array<i32>} : memref<16x32xf32, #tpu.memory_space<vmem>>, vector<16x32xf32>,
    } else {
    }
    %c0 = arith.constant 0 : index
    %c0_1 = arith.constant 0 : index
    %3 = vector.load %arg2[%c0, %c0_1] : memref<16x32xf32, #tpu.memory_space<vmem>>, vector<16x32xf32>
    %4 = arith.truncf %3 : vector<16x32xf32> to vector<16x32xbf16>
    %c0_2 = arith.constant 0 : index
    %c0_3 = arith.constant 0 : index
    %5 = vector.load %arg3[%c0_2, %c0_3] : memref<32x64xbf16, #tpu.memory_space<vmem>>, vector<32x64xbf16>
    %cst = arith.constant dense<0.000000e+00> : vector<16x64xf32>
    %6 = tpu.matmul %4, %5, %cst {dimension_numbers = #tpu.dot_dimension_numbers<[1], [0], [0], [1], [0, 0, 1, 1], [], []>} : vector<16x32xbf16>, vector<32x64xbf16>, vector<16x64xf32> -> vector<16x64xf32>
    %c0_4 = arith.constant 0 : index
    %c0_5 = arith.constant 0 : index
    %7 = vector.load %arg4[%c0_4, %c0_5] : memref<1x64xf32, #tpu.memory_space<vmem>>, vector<1x64xf32>
    %8 = vector.broadcast %7 : vector<1x64xf32> to vector<16x64xf32>
    %9 = arith.addf %6, %8 : vector<16x64xf32>
    %cst_6 = arith.constant 0.000000e+00 : f32
    %10 = vector.broadcast %cst_6 : f32 to vector<16x64xf32>
    %11 = arith.maximumf %9, %10 : vector<16x64xf32>
    %c0_7 = arith.constant 0 : index
    %c0_8 = arith.constant 0 : index
    %12 = vector.load %arg10[%c0_7, %c0_8] : memref<16x32xf32, #tpu.memory_space<vmem>>, vector<16x32xf32>
    %13 = arith.truncf %11 : vector<16x64xf32> to vector<16x64xbf16>
    %c0_9 = arith.constant 0 : index
    %c0_10 = arith.constant 0 : index
    %14 = vector.load %arg5[%c0_9, %c0_10] : memref<64x32xbf16, #tpu.memory_space<vmem>>, vector<64x32xbf16>
    %cst_11 = arith.constant dense<0.000000e+00> : vector<16x32xf32>
    %15 = tpu.matmul %13, %14, %cst_11 {dimension_numbers = #tpu.dot_dimension_numbers<[1], [0], [0], [1], [0, 0, 1, 1], [], []>} : vector<16x64xbf16>, vector<64x32xbf16>, vector<16x32xf32> -> vector<16x32xf32>
    %16 = arith.addf %12, %15 : vector<16x32xf32>
    %c0_12 = arith.constant 0 : index
    %c0_13 = arith.constant 0 : index
    %17 = vector.load %arg10[%c0_12, %c0_13] : memref<16x32xf32, #tpu.memory_space<vmem>>, vector<16x32xf32>
    tpu.vector_store %arg10[%c0_12, %c0_13], %16 {strides = array<i32>} : memref<16x32xf32, #tpu.memory_space<vmem>>, vector<16x32xf32>,
    %c0_i32_14 = arith.constant 0 : i32
    %18 = arith.cmpi eq, %arg1, %c0_i32_14 : i32
    %19 = arith.extui %18 : i1 to i32
    %c0_i32_15 = arith.constant 0 : i32
    %20 = arith.cmpi ne, %19, %c0_i32_15 : i32
    scf.if %20 {
      %c0_16 = arith.constant 0 : index
      %c0_17 = arith.constant 0 : index
      %21 = vector.load %arg10[%c0_16, %c0_17] : memref<16x32xf32, #tpu.memory_space<vmem>>, vector<16x32xf32>
      %22 = arith.addf %3, %21 : vector<16x32xf32>
      %c0_18 = arith.constant 0 : index
      %c0_19 = arith.constant 0 : index
      %23 = vector.load %arg6[%c0_18, %c0_19] : memref<1x32xf32, #tpu.memory_space<vmem>>, vector<1x32xf32>
      %24 = vector.broadcast %23 : vector<1x32xf32> to vector<16x32xf32>
      %25 = arith.addf %22, %24 : vector<16x32xf32>
      %cst_20 = arith.constant dense<0.000000e+00> : vector<16xf32>
      %26 = vector.multi_reduction <add>, %25, %cst_20 [1] : vector<16x32xf32> to vector<16xf32>
      %27 = vector.shape_cast %26 : vector<16xf32> to vector<16x1xf32>
      %cst_21 = arith.constant 3.200000e+01 : f32
      %28 = vector.broadcast %cst_21 : f32 to vector<16x1xf32>
      %29 = arith.divf %27, %28 : vector<16x1xf32>
      %30 = vector.broadcast %29 : vector<16x1xf32> to vector<16x32xf32>
      %31 = arith.subf %25, %30 : vector<16x32xf32>
      %32 = arith.mulf %31, %31 : vector<16x32xf32>
      %cst_22 = arith.constant dense<0.000000e+00> : vector<16xf32>
      %33 = vector.multi_reduction <add>, %32, %cst_22 [1] : vector<16x32xf32> to vector<16xf32>
      %34 = vector.shape_cast %33 : vector<16xf32> to vector<16x1xf32>
      %cst_23 = arith.constant 3.200000e+01 : f32
      %35 = vector.broadcast %cst_23 : f32 to vector<16x1xf32>
      %36 = arith.divf %34, %35 : vector<16x1xf32>
      %37 = vector.broadcast %29 : vector<16x1xf32> to vector<16x32xf32>
      %38 = arith.subf %25, %37 : vector<16x32xf32>
      %cst_24 = arith.constant 9.99999974E-6 : f32
      %39 = vector.broadcast %cst_24 : f32 to vector<16x1xf32>
      %40 = arith.addf %36, %39 : vector<16x1xf32>
      %41 = math.rsqrt %40 : vector<16x1xf32>
      %42 = vector.broadcast %41 : vector<16x1xf32> to vector<16x32xf32>
      %43 = arith.mulf %38, %42 : vector<16x32xf32>
      %c0_25 = arith.constant 0 : index
      %c0_26 = arith.constant 0 : index
      %44 = vector.load %arg7[%c0_25, %c0_26] : memref<1x32xf32, #tpu.memory_space<vmem>>, vector<1x32xf32>
      %45 = vector.broadcast %44 : vector<1x32xf32> to vector<16x32xf32>
      %46 = arith.mulf %43, %45 : vector<16x32xf32>
      %c0_27 = arith.constant 0 : index
      %c0_28 = arith.constant 0 : index
      %47 = vector.load %arg8[%c0_27, %c0_28] : memref<1x32xf32, #tpu.memory_space<vmem>>, vector<1x32xf32>
      %48 = vector.broadcast %47 : vector<1x32xf32> to vector<16x32xf32>
      %49 = arith.addf %46, %48 : vector<16x32xf32>
      %c0_29 = arith.constant 0 : index
      %c0_30 = arith.constant 0 : index
      %50 = vector.load %arg9[%c0_29, %c0_30] : memref<16x32xf32, #tpu.memory_space<vmem>>, vector<16x32xf32>
      tpu.vector_store %arg9[%c0_29, %c0_30], %49 {strides = array<i32>} : memref<16x32xf32, #tpu.memory_space<vmem>>, vector<16x32xf32>,
    } else {
    }
    return
  }
  func.func @transform_0(%arg0: i32, %arg1: i32) -> (i32, i32) {
    %c0_i32 = arith.constant 0 : i32
    %c0_i32_0 = arith.constant 0 : i32
    return %arg0, %c0_i32 : i32, i32
  }
  func.func @transform_1(%arg0: i32, %arg1: i32) -> (i32, i32) {
    %c0_i32 = arith.constant 0 : i32
    %c0_i32_0 = arith.constant 0 : i32
    return %c0_i32, %arg1 : i32, i32
  }
  func.func @transform_2(%arg0: i32, %arg1: i32) -> (i32, i32) {
    %c0_i32 = arith.constant 0 : i32
    %c0_i32_0 = arith.constant 0 : i32
    return %c0_i32, %arg1 : i32, i32
  }
  func.func @transform_3(%arg0: i32, %arg1: i32) -> (i32, i32) {
    %c0_i32 = arith.constant 0 : i32
    %c0_i32_0 = arith.constant 0 : i32
    return %arg1, %c0_i32 : i32, i32
  }
  func.func @transform_4(%arg0: i32, %arg1: i32) -> (i32, i32) {
    %c0_i32 = arith.constant 0 : i32
    %c0_i32_0 = arith.constant 0 : i32
    %c0_i32_1 = arith.constant 0 : i32
    return %c0_i32, %c0_i32_0 : i32, i32
  }
  func.func @transform_5(%arg0: i32, %arg1: i32) -> (i32, i32) {
    %c0_i32 = arith.constant 0 : i32
    %c0_i32_0 = arith.constant 0 : i32
    %c0_i32_1 = arith.constant 0 : i32
    return %c0_i32, %c0_i32_0 : i32, i32
  }
  func.func @transform_6(%arg0: i32, %arg1: i32) -> (i32, i32) {
    %c0_i32 = arith.constant 0 : i32
    %c0_i32_0 = arith.constant 0 : i32
    %c0_i32_1 = arith.constant 0 : i32
    return %c0_i32, %c0_i32_0 : i32, i32
  }
  func.func @transform_7(%arg0: i32, %arg1: i32) -> (i32, i32) {
    %c0_i32 = arith.constant 0 : i32
    %c0_i32_0 = arith.constant 0 : i32
    return %arg0, %c0_i32 : i32, i32
  }
}

</mosaic_0001>

<bundles_post_ra>
// kernel: decoder_forward.6
= control target key start
LH: loop header
LB: loop body
LE: loop exit
PB: predicated region body
PF: predicated region fallthrough
CT: control target
= control target key end

     0   :  { %vm31_vm0 = vcmask 261120   ;;  %v310_v0 = vmov 0.0   ;;  %vm311_vm1 = vmmov 0   ;;  %vm142_vm2 = vcmask 523264   ;;  %s405_s1 = inlined_call_operand.vmem [shape: bf16[32,64], index: 1, kind: input, shape index: {}]   ;;  %s406_s0 = inlined_call_operand.vmem [shape: f32[16,32], index: 0, kind: input, shape index: {}]   ;;  %s407_s3 = inlined_call_operand.vmem [shape: bf16[64,32], index: 3, kind: input, shape index: {}]   ;;  %s408_s2 = inlined_call_operand.vmem [shape: f32[1,64], index: 2, kind: input, shape index: {}]   ;;  %s409_s4 = inlined_call_operand.vmem [shape: f32[1,32], index: 4, kind: input, shape index: {}]   ;;  %s410_s5 = inlined_call_operand.vmem [shape: f32[1,32], index: 5, kind: input, shape index: {}]   ;;  %s411_s6 = inlined_call_operand.vmem [shape: f32[1,32], index: 6, kind: input, shape index: {}]   ;;  %s412_s7 = inlined_call_operand.vmem [shape: f32[16,32], index: 7, kind: output, shape index: {}]  }
   0x1   :  { %278 = vmatprep.subr.bf16.mxu0 %v310_v0  ;;  %v300_v1 = vld [vmem:[%s405_s1] sm:$0xff]   ;;  %282 = vmatprep.mubr.msk.bf16.mxu0 %vm311_vm1, %v310_v0  ;;  %32 = vst.msk [vmem:[#allocation2] sm:$0xff] %vm31_vm0, %v310_v0  ;;  %33 = vst.msk [vmem:[#allocation2 + $0x8] sm:$0xff] %vm31_vm0, %v310_v0  ;;  %v301_v2 = vld [vmem:[%s405_s1 + $0x8] sm:$0xff]  }
   0x2   :  { %286 = vmatprep.subr.bf16.mxu1 %v310_v0  ;;  %294 = vmatprep.mubr.msk.bf16.mxu1 %vm311_vm1, %v310_v0  ;;  %v34_v3 = vld [vmem:[%s406_s0] sm:$0xff]  ;;  %v35_v4 = vld [vmem:[%s406_s0 + $0x8] sm:$0xff]  ;;  %v304_v8 = vld [vmem:[%s407_s3 + $0x10] sm:$0xff]  }
   0x3   :  { %279 = vmatpush3.bf16.msra.mxu0 %v300_v1  ;;  %v302_v5 = vld [vmem:[%s407_s3] sm:$0xff]   ;;  %v303_v6 = vld [vmem:[%s407_s3 + $0x8] sm:$0xff]   ;;  %v36_v7 = vpack.c.bf16 %v35_v4, %v34_v3  ;;  %v305_v9 = vld [vmem:[%s407_s3 + $0x18] sm:$0xff]  }
   0x4   :  { %280 = vmatprep.subr.bf16.mxu0 %v310_v0  ;;  %287 = vmatpush3.bf16.msra.mxu1 %v302_v5  ;;  %v258_v10 = vld [vmem:[%s408_s2] ss:$0 sm:$0xff] }
   0x5   :  { %288 = vmatprep.subr.bf16.mxu1 %v310_v0  ;;  %v267_v29 = vld [vmem:[%s409_s4] ss:$0 sm:$0xff] }
   0x6   :  { %v268_v54 = vld [vmem:[%s410_s5] ss:$0 sm:$0xff] }
   0x7   :  { %281 = vmatpush3.bf16.msra.mxu0 %v301_v2  ;;  %v269_v56 = vld [vmem:[%s411_s6] ss:$0 sm:$0xff] }
   0x8   :  { %289 = vmatpush3.bf16.msra.mxu1 %v303_v6  ;;  %v107_v20 = vld [vmem:[#allocation2] sm:$0xff]  ;;  %v108_v22 = vld [vmem:[#allocation2 + $0x8] sm:$0xff] }
   0x9   :  { %290 = vmatprep.subr.bf16.mxu1 %v310_v0 }
   0xa   :  { %283 = vmatmul.mubr.msk.bf16.vlgmr.msra.gmra.mrb[0].mxu0 %vm31_vm0, %v36_v7 }
   0xc   :  { %291 = vmatpush3.bf16.msra.mxu1 %v304_v8 }
   0xd   :  { %292 = vmatprep.subr.bf16.mxu1 %v310_v0 }
  0x10   :  { %293 = vmatpush3.bf16.msra.mxu1 %v305_v9 }
  0xdd   :  { %v98_v11 = vpop.f32.mrb[0].mxu0 }
  0xde   :  { %v99_v12 = vadd.f32 %v258_v10, %v98_v11  ;;  %v284_v13 = vpop.f32.mrb[1].mxu0 }
  0xdf   :  { %v101_v14 = vpop.f32.mrb[2].mxu0 }
  0xe0   :  { %v102_v15 = vadd.f32 %v258_v10, %v101_v14  ;;  %v285_v16 = vpop.f32.mrb[3].mxu0  ;;  %v105_v17 = vmax.f32 %v99_v12, 0.0 }
  0xe2   :  { %v106_v18 = vmax.f32 %v102_v15, 0.0 }
  0xe4   :  { %v109_v19 = vpack.c.bf16 %v106_v18, %v105_v17 }
  0xe6   :  { %295 = vmatmul.mubr.msk.bf16.vlgmr.msra.gmra.mrb[0].mxu1 %vm142_vm2, %v109_v19 }
 0x1b9   :  { %v180_v21 = vpop.f32.mrb[0].mxu1 }
 0x1ba   :  { %v187_v23 = vadd.f32 %v180_v21, %v107_v20  ;;  %v296_v24 = vpop.f32.mrb[1].mxu1 }
 0x1bb   :  { %v183_v25 = vpop.f32.mrb[2].mxu1 }
 0x1bc   :  { %189 = vst.msk [vmem:[#allocation2] sm:$0xff] %vm31_vm0, %v187_v23  ;;  %v188_v26 = vadd.f32 %v183_v25, %v108_v22  ;;  %v297_v27 = vpop.f32.mrb[3].mxu1 }
 0x1be   :  { %190 = vst.msk [vmem:[#allocation2 + $0x8] sm:$0xff] %vm31_vm0, %v188_v26 }
 0x1c3   :  { %v194_v28 = vld [vmem:[#allocation2] sm:$0xff] }
 0x1c4   :  { %v196_v30 = vadd.f32 %v194_v28, %v34_v3 }
 0x1c5   :  { %v195_v31 = vld [vmem:[#allocation2 + $0x8] sm:$0xff] }
 0x1c6   :  { %v205_v32 = vadd.f32 %v267_v29, %v196_v30  ;;  %v197_v33 = vadd.f32 %v195_v31, %v35_v4 }
 0x1c8   :  { %v207_v34 = vsel %vm31_vm0, %v205_v32, 0.0  ;;  %v206_v35 = vadd.f32 %v267_v29, %v197_v33 }
 0x1c9   :  { %208 = vadd.xlane.f32.xlu0 %v207_v34 }
 0x1ca   :  { %v210_v36 = vsel %vm31_vm0, %v206_v35, 0.0 }
 0x1cd   :  { %211 = vadd.xlane.f32.xlu0 %v210_v36 }
 0x256   :  { %v209_v37 = vpop.xlane.xlu0 %208 }
 0x257   :  { %v214_v38 = vmul.f32 0.03125, %v209_v37 }
 0x259   :  { %v216_v39 = vsub.f32 %v205_v32, %v214_v38 }
 0x25a   :  { %v212_v40 = vpop.xlane.xlu0 %211 }
 0x25b   :  { %v215_v41 = vmul.f32 0.03125, %v212_v40  ;;  %v218_v42 = vmul.f32 %v216_v39, %v216_v39 }
 0x25d   :  { %v217_v43 = vsub.f32 %v206_v35, %v215_v41  ;;  %v220_v44 = vsel %vm31_vm0, %v218_v42, 0.0 }
 0x25e   :  { %221 = vadd.xlane.f32.xlu1 %v220_v44 }
 0x25f   :  { %v219_v45 = vmul.f32 %v217_v43, %v217_v43 }
 0x261   :  { %v223_v46 = vsel %vm31_vm0, %v219_v45, 0.0 }
 0x262   :  { %224 = vadd.xlane.f32.xlu1 %v223_v46 }
 0x2eb   :  { %v222_v47 = vpop.xlane.xlu1 %221 }
 0x2ec   :  { %v226_v48 = vmul.f32 0.03125, %v222_v47 }
 0x2ee   :  { %v228_v49 = vadd.f32 1e-05, %v226_v48 }
 0x2ef   :  { %v225_v50 = vpop.xlane.xlu1 %224 }
 0x2f0   :  { %306 = vrsqrt.f32 %v228_v49  ;;  %v227_v51 = vmul.f32 0.03125, %v225_v50 }
 0x2f2   :  { %v229_v52 = vadd.f32 1e-05, %v227_v51 }
 0x2f4   :  { %308 = vrsqrt.f32 %v229_v52 }
 0x2fa   :  { %v307_v53 = vpop.eup %306 }
 0x2fb   :  { %v232_v55 = vmul.f32 %v307_v53, %v216_v39 }
 0x2fd   :  { %v241_v57 = vmul.f32 %v268_v54, %v232_v55 }
 0x2fe   :  { %v309_v58 = vpop.eup %308 }
 0x2ff   :  { %v250_v59 = vadd.f32 %v269_v56, %v241_v57  ;;  %v233_v60 = vmul.f32 %v309_v58, %v217_v43 }
 0x301   :  { %252 = vst.msk [vmem:[%s412_s7] sm:$0xff] %vm31_vm0, %v250_v59  ;;  %v242_v61 = vmul.f32 %v268_v54, %v233_v60 }
 0x303   :  { %v251_v62 = vadd.f32 %v269_v56, %v242_v61 }
 0x305   :  { %253 = vst.msk [vmem:[%s412_s7 + $0x8] sm:$0xff] %vm31_vm0, %v251_v62 }

// kernel: decoder_forward.9
= control target key start
LH: loop header
LB: loop body
LE: loop exit
PB: predicated region body
PF: predicated region fallthrough
CT: control target
= control target key end

     0   :  { %vm24_vm0 = vcmask 261120   ;;  %s283_s0 = inlined_call_operand.vmem [shape: f32[16,32], index: 0, kind: input, shape index: {}]   ;;  %s284_s1 = inlined_call_operand.vmem [shape: f32[1,32], index: 1, kind: input, shape index: {}]   ;;  %s285_s2 = inlined_call_operand.vmem [shape: f32[1,32], index: 2, kind: input, shape index: {}]   ;;  %s286_s3 = inlined_call_operand.vmem [shape: bf16[32,32], index: 3, kind: input, shape index: {}]   ;;  %s287_s4 = inlined_call_operand.vmem [shape: f32[1,32], index: 4, kind: input, shape index: {}]   ;;  %s288_s5 = inlined_call_operand.hbm [shape: f32[16,32], index: 5, kind: output, shape index: {}]  }
   0x1   :  { %v22_v0 = vld [vmem:[%s283_s0] sm:$0xff]  ;;  %v23_v1 = vld [vmem:[%s283_s0 + $0x8] sm:$0xff] }
   0x2   :  { %v25_v2 = vsel %vm24_vm0, %v22_v0, 0.0 }
   0x3   :  { %26 = vadd.xlane.f32.xlu0 %v25_v2 }
   0x4   :  { %10 = vsyncpa [#allocation3], 0  ;;  %v28_v3 = vsel %vm24_vm0, %v23_v1, 0.0  ;;  %v178_v14 = vld [vmem:[%s286_s3] sm:$0xff]   ;;  %v208_v15 = vmov 0.0   ;;  %v179_v16 = vld [vmem:[%s286_s3 + $0x8] sm:$0xff]  }
   0x5   :  { %165 = vmatprep.subr.bf16.mxu0 %v208_v15  ;;  %vm209_vm1 = vmmov 0   ;;  %v156_v25 = vld [vmem:[%s284_s1] ss:$0 sm:$0xff]  ;;  %s210_s30 = smov [#allocation2]  }
   0x6   :  { %166 = vmatpush3.bf16.msra.mxu0 %v178_v14  ;;  %169 = vmatprep.mubr.msk.bf16.mxu0 %vm209_vm1, %v208_v15  ;;  %v157_v29 = vld [vmem:[%s285_s2] ss:$0 sm:$0xff]  ;;  %s145_s6 = sshll.u32 %s210_s30, 4  ;;  %s146_s6 = int_to_ptr.vmem [resolvable:$true] %s145_s6 }
   0x7   :  { %29 = vadd.xlane.f32.xlu0 %v28_v3  ;;  %167 = vmatprep.subr.bf16.mxu0 %v208_v15  ;;  %v158_v34 = vld [vmem:[%s287_s4] ss:$0 sm:$0xff]  ;;  %s184_s1 = scalar_lea.vmem %s146_s6, 256  ;;  %p189_p1 = scmp.lt.s32.totalorder %s146_s6, %s146_s6 }
   0x8   :  { %p185_p0 = scmp.ne.s32.totalorder %s146_s6, %s184_s1  ;;  %p190_p2 = scmp.lt.s32.totalorder %s184_s1, %s184_s1 }
   0xa   :  { %168 = vmatpush3.bf16.msra.mxu0 %v179_v16  ;;  %p191_p3 = por %p190_p2, %p189_p1 }
   0xc   :  { %p192_p4 = pnand %p191_p3, %p185_p0 }
  0x90   :  { %v27_v4 = vpop.xlane.xlu0 %26 }
  0x91   :  { %v32_v5 = vmul.f32 0.03125, %v27_v4 }
  0x93   :  { %v34_v6 = vsub.f32 %v22_v0, %v32_v5 }
  0x94   :  { %v30_v7 = vpop.xlane.xlu0 %29 }
  0x95   :  { %v33_v8 = vmul.f32 0.03125, %v30_v7  ;;  %v36_v9 = vmul.f32 %v34_v6, %v34_v6 }
  0x97   :  { %v35_v10 = vsub.f32 %v23_v1, %v33_v8  ;;  %v38_v11 = vsel %vm24_vm0, %v36_v9, 0.0 }
  0x98   :  { %39 = vadd.xlane.f32.xlu1 %v38_v11 }
  0x99   :  { %v37_v12 = vmul.f32 %v35_v10, %v35_v10 }
  0x9b   :  { %v41_v13 = vsel %vm24_vm0, %v37_v12, 0.0 }
  0x9c   :  { %42 = vadd.xlane.f32.xlu1 %v41_v13 }
 0x125   :  { %v40_v17 = vpop.xlane.xlu1 %39 }
 0x126   :  { %v44_v18 = vmul.f32 0.03125, %v40_v17 }
 0x128   :  { %v46_v19 = vadd.f32 1e-05, %v44_v18 }
 0x129   :  { %v43_v20 = vpop.xlane.xlu1 %42 }
 0x12a   :  { %180 = vrsqrt.f32 %v46_v19  ;;  %v45_v21 = vmul.f32 0.03125, %v43_v20 }
 0x12c   :  { %v47_v22 = vadd.f32 1e-05, %v45_v21 }
 0x12e   :  { %182 = vrsqrt.f32 %v47_v22 }
 0x134   :  { %v181_v23 = vpop.eup %180 }
 0x135   :  { %v50_v24 = vmul.f32 %v181_v23, %v34_v6 }
 0x137   :  { %v59_v28 = vmul.f32 %v156_v25, %v50_v24 }
 0x138   :  { %v183_v26 = vpop.eup %182 }
 0x139   :  { %v51_v27 = vmul.f32 %v183_v26, %v35_v10  ;;  %v68_v31 = vadd.f32 %v157_v29, %v59_v28 }
 0x13b   :  { %v60_v30 = vmul.f32 %v156_v25, %v51_v27 }
 0x13d   :  { %v69_v32 = vadd.f32 %v157_v29, %v60_v30 }
 0x13f   :  { %v70_v33 = vpack.c.bf16 %v69_v32, %v68_v31 }
 0x141   :  { %170 = vmatmul.mubr.msk.bf16.vlgmr.msra.gmra.mrb[0].mxu0 %vm24_vm0, %v70_v33 }
 0x214   :  { %v131_v35 = vpop.f32.mrb[0].mxu0 }
 0x215   :  { %v132_v36 = vadd.f32 %v158_v34, %v131_v35  ;;  %v171_v37 = vpop.f32.mrb[1].mxu0 }
 0x216   :  { %v134_v38 = vpop.f32.mrb[2].mxu0 }
 0x217   :  { %138 = vst.msk [vmem:[#allocation2] sm:$0xff] %vm24_vm0, %v132_v36  ;;  %v135_v39 = vadd.f32 %v158_v34, %v134_v38  ;;  %v172_v40 = vpop.f32.mrb[3].mxu0 }
 0x219   :  { %139 = vst.msk [vmem:[#allocation2 + $0x8] sm:$0xff] %vm24_vm0, %v135_v39 }
 0x21a   :  { %195 = shalt.err (!%p192_p4)
}
 0x21b   :  { %s196_s7 = scalar_lea.hbm %s288_s5, 256 }
 0x21c   :  { %p197_p5 = scmp.ne.s32.totalorder %s288_s5, %s196_s7  ;;  %p200_p6 = scmp.lt.u32.totalorder %s196_s7, %s288_s5 }
 0x21e   :  { %p202_p7 = pnand %p200_p6, %p197_p5 }
 0x220   :  { %205 = shalt.err (!%p202_p7)
}
 0x221   :  { %s211_s12 = smov 128   ;;  %s212_s13 = smov 8  }
 0x222   :  { %151 = dma.vmem_to_hbm [thread:$0]  %s146_s6, 256, %s288_s5, [#allocation3], %s211_s12, %s211_s12, %s212_s13  }
 0x223   :  { %206 = dma.done.wait [#allocation3], 256  }
 0x224   :  { %207 = vsyncadd [#allocation3], 4294967040 }
 0x225   :  { %155 = vsyncpa [#allocation3], 1 }

// kernel: decoder_forward.5
= control target key start
LH: loop header
LB: loop body
LE: loop exit
PB: predicated region body
PF: predicated region fallthrough
CT: control target
= control target key end

     0   :  { %s3604_s27 = smov 0   ;;  %s4086_s0 = inlined_call_operand.vmem [shape: f32[2,8,32], index: 0, kind: input, shape index: {}]   ;;  %s4087_s1 = inlined_call_operand.vmem [shape: f32[2,8,32], index: 1, kind: input, shape index: {}]   ;;  %s4088_s2 = inlined_call_operand.vmem [shape: bf16[32,32], index: 2, kind: input, shape index: {}]   ;;  %s4089_s3 = inlined_call_operand.vmem [shape: f32[1,32], index: 3, kind: input, shape index: {}]   ;;  %s4090_s4 = inlined_call_operand.vmem [shape: bf16[32,64], index: 4, kind: input, shape index: {}]   ;;  %s4091_s5 = inlined_call_operand.vmem [shape: f32[1,64], index: 5, kind: input, shape index: {}]   ;;  %s4092_s6 = inlined_call_operand.vmem [shape: bf16[32,32], index: 6, kind: input, shape index: {}]   ;;  %s4093_s7 = inlined_call_operand.vmem [shape: f32[1,32], index: 7, kind: input, shape index: {}]   ;;  %s4094_s8 = inlined_call_operand.vmem [shape: f32[1,32], index: 8, kind: input, shape index: {}]   ;;  %s4095_s9 = inlined_call_operand.vmem [shape: f32[1,32], index: 9, kind: input, shape index: {}]   ;;  %s4096_s10 = inlined_call_operand.vmem [shape: bf16[32,32], index: 10, kind: input, shape index: {}]   ;;  %s4097_s11 = inlined_call_operand.vmem [shape: f32[1,32], index: 11, kind: input, shape index: {}]   ;;  %s4098_s12 = inlined_call_operand.vmem [shape: bf16[32,64], index: 12, kind: input, shape index: {}]   ;;  %s4099_s13 = inlined_call_operand.vmem [shape: f32[1,64], index: 13, kind: input, shape index: {}]   ;;  %s4100_s14 = inlined_call_operand.vmem [shape: bf16[32,32], index: 14, kind: input, shape index: {}]   ;;  %s4101_s15 = inlined_call_operand.vmem [shape: f32[1,32], index: 15, kind: input, shape index: {}]   ;;  %s4102_s16 = inlined_call_operand.vmem [shape: f32[1,32], index: 16, kind: input, shape index: {}]   ;;  %s4103_s17 = inlined_call_operand.vmem [shape: f32[1,32], index: 17, kind: input, shape index: {}]   ;;  %s4104_s18 = inlined_call_operand.vmem [shape: f32[2,8,32], index: 18, kind: output, shape index: {}]  }
   0x1   :  { %4109 = sst [smem:[#allocation2_spill]] %s4086_s0 }
   0x2   :  { %4110 = sst [smem:[#allocation3_spill]] %s4087_s1 }
   0x3   :  { %4111 = sst [smem:[#allocation4_spill]] %s4088_s2 }
   0x4 LB: > { %s3159_s28 = sadd.s32 4294967295, %s3496_s27   ;;  %p3163_p0 = scmp.ge.s32.totalorder %s3496_s27, 1  ;;  %s3496_s27 = sphi %s3604_s27, %s28_s27  }
   0x5   : > { %p520_p1 = scmp.lt.s32.totalorder %s3496_s27, 3 }
   0x7   : > { %p521_p2 = pnand %p3163_p0, %p520_p1 }
   0x8   : > { %v3442_v0 = vld [vmem:[%s4090_s4] sm:$0xff] (!%p521_p2)   ;;  %v3498_v1 = vmov (!%p521_p2), 0.0   ;;  %s4112_s1 = sld [smem:[#allocation4_spill]] (!%p521_p2)  ;;  %v3444_v3 = vld [vmem:[%s4090_s4 + $0x8] sm:$0xff] (!%p521_p2)   ;;  %vm3499_vm0 = vmmov (!%p521_p2), 0   ;;  %p576_p3 = scmp.lt.s32.totalorder (!%p521_p2), %s3159_s28, 1  ;;  %v737_v21 = vlaneseq (!%p521_p2) }
   0x9   : > { %524 = sbr.rel (%p521_p2) target bundleno = 3669 (0xe55), region = 92  ;;  %3287 = vmatprep.subr.bf16.mxu1 (!%p521_p2), %v3498_v1  ;;  %3279 = vmatprep.subr.bf16.mxu0 (!%p521_p2), %v3498_v1  ;;  %s4113_s26 = sld [smem:[#allocation2_spill]] (!%p521_p2)  ;;  %vm615_vm1 = vcmask (!%p521_p2), 261120   ;;  %v3171_v7 = vld [vmem:[%s4091_s5] ss:$0 sm:$0xff] (!%p521_p2)  ;;  %vm1174_vm2 = vcmask (!%p521_p2), 64512  }
   0xa   : > { %3288 = vmatpush3.bf16.msra.mxu1 (!%p521_p2), %v3442_v0  ;;  %3291 = vmatprep.mubr.msk.bf16.mxu1 (!%p521_p2), %vm3499_vm0, %v3498_v1  ;;  %v3167_v9 = vld [vmem:[%s4089_s3] ss:$0 sm:$0xff] (!%p521_p2)  ;;  %s3500_s20 = smov (!%p521_p2), 104   ;;  %s3501_s21 = smov (!%p521_p2), 120   ;;  %v3503_v19 = vmov (!%p521_p2), 1983009808  }
   0xb   : > { %3289 = vmatprep.subr.bf16.mxu1 (!%p521_p2), %v3498_v1  ;;  %3283 = vmatprep.mubr.msk.bf16.mxu0 (!%p521_p2), %vm3499_vm0, %v3498_v1  ;;  %s3502_s22 = smov (!%p521_p2), 112   ;;  %v735_v20 = vunpack.c.l.s4 (!%p521_p2), %v3503_v19  ;;  %v3504_v22 = vmov (!%p521_p2), 1934713408   ;;  %v738_v25 = vshrl.u32 (!%p521_p2), %v737_v21, 7  ;;  %s3505_s2 = smov (!%p521_p2), 96   ;;  %vm1410_vm3 = vcmask (!%p521_p2), 1043456  }
   0xc   : > { %v767_v23 = vunpack.c.l.s4 (!%p521_p2), %v3504_v22  ;;  %s4107_s30 = smov (!%p521_p2), 8   ;;  %s4106_s0 = smov (!%p521_p2), 24   ;;  %vm1741_vm4 = vcmask (!%p521_p2), 130048   ;;  %vm1743_vm5 = vcmask (!%p521_p2), 195584  }
   0xd   : > { %v736_v24 = vunpack.c.0.s8 (!%p521_p2), %v735_v20  ;;  %s4117_s19 = smov (!%p521_p2), 24  }
   0xe   : > { %v3443_v2 = vld [vmem:[%s4112_s1] sm:$0xff] (!%p521_p2)   ;;  %v3445_v4 = vld [vmem:[%s4112_s1 + $0x8] sm:$0xff] (!%p521_p2)   ;;  %3290 = vmatpush3.bf16.msra.mxu1 (!%p521_p2), %v3444_v3  ;;  %v768_v28 = vunpack.c.0.s8 (!%p521_p2), %v767_v23 }
   0xf   : > { %3280 = vmatpush3.bf16.msra.mxu0 (!%p521_p2), %v3443_v2  ;;  %3301 = vmatprep.subr.bf16.mxu1 (!%p521_p2), %v3498_v1  ;;  %v3671_v29 = vsub.s32 (!%p521_p2), %v736_v24, %v738_v25 }
  0x10   : > { %3281 = vmatprep.subr.bf16.mxu0 %v3498_v1  ;;  %s4119_s28 = smov (!%p576_p3, %s3159_s28), 1  ;;  %v3683_v36 = vsub.s32 %v768_v28, %v738_v25 }
  0x11   : > { %s3632_s23 = sshll.u32 %s4119_s28, 3  ;;  %s4108_s28 = smov 16  }
  0x12   : > { %s579_s29 = scalar_lea.vmem %s4113_s26, %s3632_s23  ;;  %s4115_s26 = smov 16  }
  0x13   : > { %3282 = vmatpush3.bf16.msra.mxu0 %v3445_v4  ;;  %v3639_v5 = vld [vmem:[%s579_s29] sm:$0xff]  ;;  %s4116_s29 = smov 8  }
  0x14   : > { %3295 = vmatprep.subr.bf16.mxu0 %v3498_v1  ;;  %v591_v6 = vpack.c.bf16 %v3639_v5, %v3639_v5 }
  0x16   : > { %3292 = vmatmul.mubr.msk.bf16.vlgmr.msra.gmra.mrb[0].mxu1 %vm615_vm1, %v591_v6  ;;  %3284 = vmatmul.mubr.msk.bf16.vlgmr.msra.gmra.mrb[0].mxu0 %vm615_vm1, %v591_v6 }
  0x17   : > { %3297 = vmatprep.mubr.msk.bf16.mxu0 %vm3499_vm0, %v3498_v1  ;;  %3303 = vmatprep.mubr.msk.bf16.mxu1 %vm3499_vm0, %v3498_v1 }
  0xe9   : > { %v716_v8 = vpop.f32.mrb[0].mxu1  ;;  %v653_v10 = vpop.f32.mrb[0].mxu0 }
  0xea   : > { %v3656_v11 = vadd.f32 %v3171_v7, %v716_v8  ;;  %v3293_v12 = vpop.f32.mrb[1].mxu1  ;;  %v3285_v13 = vpop.f32.mrb[1].mxu0  ;;  %v654_v17 = vadd.f32 %v3167_v9, %v653_v10 }
  0xeb   : > { %v719_v14 = vpop.f32.mrb[2].mxu1  ;;  %v656_v15 = vpop.f32.mrb[2].mxu0 }
  0xec   : > { %879 = vrot.lane.b32.xlu1 %v3656_v11, %s3500_s20  ;;  %873 = vrot.lane.b32.xlu0 %v3656_v11, %s3501_s21  ;;  %v3294_v16 = vpop.f32.mrb[3].mxu1  ;;  %v3286_v18 = vpop.f32.mrb[3].mxu0 }
  0xf0   : > { %876 = vrot.lane.b32.xlu0 %v3656_v11, %s3502_s22  ;;  %723 = vrot.lane.b32.xlu1 %v654_v17, %s3501_s21 }
  0xf4   : > { %726 = vrot.lane.b32.xlu0 %v654_v17, %s3502_s22  ;;  %729 = vrot.lane.b32.xlu1 %v654_v17, %s3500_s20 }
 0x15e   : > { %v3667_v26 = vpop.permute.xlu1 %879  ;;  %v3669_v27 = vpop.permute.xlu0 %873 }
 0x15f   : > { %v898_v30 = vcombine.low %v3669_v27, %v3667_v26  ;;  %v899_v31 = vcombine.high %v3669_v27, %v3667_v26 }
 0x161   : > { %v906_v37 = vrot.slane %v898_v30, %v3671_v29  ;;  %v913_v38 = vrot.slane %v899_v31, %v3671_v29 }
 0x162   : > { %v3677_v32 = vpop.permute.xlu0 %876  ;;  %v724_v33 = vpop.permute.xlu1 %723 }
 0x163   : > { %v882_v34 = vcombine.low %v3656_v11, %v3677_v32  ;;  %v883_v35 = vcombine.high %v3656_v11, %v3677_v32 }
 0x165   : > { %v890_v39 = vrot.slane %v882_v34, %v3671_v29  ;;  %v897_v40 = vrot.slane %v883_v35, %v3671_v29 }
 0x166   : > { %v727_v41 = vpop.permute.xlu0 %726  ;;  %v730_v42 = vpop.permute.xlu1 %729 }
 0x167   : > { %v914_v43 = vcombine.low %v890_v39, %v906_v37  ;;  %v915_v44 = vcombine.high %v890_v39, %v906_v37  ;;  %v930_v45 = vcombine.low %v897_v40, %v913_v38  ;;  %v931_v46 = vcombine.high %v897_v40, %v913_v38 }
 0x168   : > { %v732_v47 = vcombine.low %v654_v17, %v727_v41  ;;  %v733_v48 = vcombine.high %v654_v17, %v727_v41  ;;  %v748_v49 = vcombine.low %v724_v33, %v730_v42  ;;  %v749_v50 = vcombine.high %v724_v33, %v730_v42 }
 0x169   : > { %v922_v51 = vrot.slane %v914_v43, %v3683_v36  ;;  %v929_v52 = vrot.slane %v915_v44, %v3683_v36  ;;  %v938_v53 = vrot.slane %v930_v45, %v3683_v36  ;;  %v945_v54 = vrot.slane %v931_v46, %v3683_v36 }
 0x16a   : > { %v740_v55 = vrot.slane %v732_v47, %v3671_v29  ;;  %v747_v56 = vrot.slane %v733_v48, %v3671_v29  ;;  %v756_v57 = vrot.slane %v748_v49, %v3671_v29  ;;  %v763_v58 = vrot.slane %v749_v50, %v3671_v29 }
 0x16b   : > { %v950_v59 = vcombine.low %v922_v51, %v929_v52  ;;  %v3177_v60 = vcombine.high %v922_v51, %v929_v52  ;;  %v966_v61 = vcombine.low %v938_v53, %v945_v54  ;;  %v3178_v62 = vcombine.high %v938_v53, %v945_v54 }
 0x16c   : > { %v764_v63 = vcombine.low %v740_v55, %v756_v57  ;;  %v765_v0 = vcombine.high %v740_v55, %v756_v57  ;;  %v780_v2 = vcombine.low %v747_v56, %v763_v58  ;;  %v781_v3 = vcombine.high %v747_v56, %v763_v58 }
 0x16d   : > { %v957_v4 = vrot.slane %v950_v59, %v3671_v29  ;;  %v965_v6 = vrot.slane %v3177_v60, %v3671_v29  ;;  %v973_v7 = vrot.slane %v966_v61, %v3671_v29  ;;  %v981_v8 = vrot.slane %v3178_v62, %v3671_v29 }
 0x16e   : > { %v772_v9 = vrot.slane %v764_v63, %v3683_v36  ;;  %v779_v10 = vrot.slane %v765_v0, %v3683_v36  ;;  %v788_v12 = vrot.slane %v780_v2, %v3683_v36  ;;  %v795_v13 = vrot.slane %v781_v3, %v3683_v36 }
 0x16f   : > { %v982_v14 = vcombine.low %v957_v4, %v965_v6  ;;  %v998_v15 = vcombine.low %v973_v7, %v981_v8  ;;  %v983_v16 = vcombine.high %v957_v4, %v965_v6  ;;  %v999_v17 = vcombine.high %v973_v7, %v981_v8 }
 0x170   : > { %v800_v18 = vcombine.low %v772_v9, %v779_v10  ;;  %v3175_v19 = vcombine.high %v772_v9, %v779_v10  ;;  %v816_v20 = vcombine.low %v788_v12, %v795_v13  ;;  %v3176_v21 = vcombine.high %v788_v12, %v795_v13 }
 0x171   : > { %v990_v22 = vrot.slane %v982_v14, %v3683_v36  ;;  %v1006_v23 = vrot.slane %v998_v15, %v3683_v36  ;;  %v997_v34 = vrot.slane %v983_v16, %v3683_v36  ;;  %v1013_v35 = vrot.slane %v999_v17, %v3683_v36 }
 0x172   : > { %v807_v24 = vrot.slane %v800_v18, %v3671_v29  ;;  %v815_v25 = vrot.slane %v3175_v19, %v3671_v29  ;;  %v823_v28 = vrot.slane %v816_v20, %v3671_v29  ;;  %v831_v30 = vrot.slane %v3176_v21, %v3671_v29 }
 0x173   : > { %v1014_v31 = vcombine.low %v990_v22, %v1006_v23  ;;  %v1015_v33 = vcombine.high %v990_v22, %v1006_v23  ;;  %v1016_v45 = vcombine.low %v997_v34, %v1013_v35  ;;  %v1017_v46 = vcombine.high %v997_v34, %v1013_v35 }
 0x174   : > { %v832_v37 = vcombine.low %v807_v24, %v815_v25  ;;  %v848_v38 = vcombine.low %v823_v28, %v831_v30  ;;  %v833_v47 = vcombine.high %v807_v24, %v815_v25  ;;  %v849_v48 = vcombine.high %v823_v28, %v831_v30 }
 0x175   : > { %v1018_v39 = vpack.c.bf16 %v1014_v31, %v1014_v31  ;;  %v1019_v40 = vpack.c.bf16 %v1015_v33, %v1015_v33  ;;  %v1020_v51 = vpack.c.bf16 %v1016_v45, %v1016_v45  ;;  %v1021_v52 = vpack.c.bf16 %v1017_v46, %v1017_v46 }
 0x176   : > { %v840_v41 = vrot.slane %v832_v37, %v3683_v36  ;;  %v856_v42 = vrot.slane %v848_v38, %v3683_v36  ;;  %v847_v55 = vrot.slane %v833_v47, %v3683_v36  ;;  %v863_v56 = vrot.slane %v849_v48, %v3683_v36 }
 0x177   : > { %v1179_v43 = vsel %vm1174_vm2, %v1018_v39, 0  ;;  %v1225_v44 = vsel %vm1174_vm2, %v1019_v40, 0  ;;  %v1271_v57 = vsel %vm1174_vm2, %v1020_v51, 0  ;;  %v1317_v58 = vsel %vm1174_vm2, %v1021_v52, 0 }
 0x178   : > { %3296 = vmatpush3.bf16.xpose.msra.mxu0 %v1179_v43  ;;  %3302 = vmatpush3.bf16.xpose.msra.mxu1 %v1225_v44  ;;  %v864_v49 = vcombine.low %v840_v41, %v856_v42  ;;  %v865_v50 = vcombine.high %v840_v41, %v856_v42  ;;  %v866_v59 = vcombine.low %v847_v55, %v863_v56 }
 0x179   : > { %3307 = vmatprep.subr.bf16.mxu0 %v3498_v1  ;;  %3313 = vmatprep.subr.bf16.mxu1 %v3498_v1  ;;  %v867_v60 = vcombine.high %v847_v55, %v863_v56 }
 0x17a   : > { %v868_v53 = vpack.c.bf16 %v864_v49, %v864_v49  ;;  %v869_v54 = vpack.c.bf16 %v865_v50, %v865_v50  ;;  %v870_v61 = vpack.c.bf16 %v866_v59, %v866_v59 }
 0x17b   : > { %v871_v62 = vpack.c.bf16 %v867_v60, %v867_v60 }
 0x17f   : > { %3298 = vmatmul.mubr.msk.bf16.vlgmr.msra.gmra.mrb[4].mxu0 %vm1174_vm2, %v868_v53  ;;  %3304 = vmatmul.mubr.msk.bf16.vlgmr.msra.gmra.mrb[4].mxu1 %vm1174_vm2, %v869_v54 }
 0x180   : > { %3308 = vmatpush3.bf16.xpose.msra.mxu0 %v1271_v57  ;;  %3314 = vmatpush3.bf16.xpose.msra.mxu1 %v1317_v58 }
 0x181   : > { %3309 = vmatprep.mubr.msk.bf16.mxu0 %vm3499_vm0, %v3498_v1  ;;  %3315 = vmatprep.mubr.msk.bf16.mxu1 %vm3499_vm0, %v3498_v1 }
 0x182   : > { %3319 = vmatprep.subr.bf16.mxu0 %v3498_v1  ;;  %3325 = vmatprep.subr.bf16.mxu1 %v3498_v1 }
 0x187   : > { %3310 = vmatmul.mubr.msk.bf16.vlgmr.msra.gmra.mrb[8].mxu0 %vm1174_vm2, %v870_v61  ;;  %3316 = vmatmul.mubr.msk.bf16.vlgmr.msra.gmra.mrb[8].mxu1 %vm1174_vm2, %v871_v62 }
 0x188   : > { %3321 = vmatprep.mubr.msk.bf16.mxu0 %vm3499_vm0, %v3498_v1  ;;  %3327 = vmatprep.mubr.msk.bf16.mxu1 %vm3499_vm0, %v3498_v1 }
 0x252   : > { %v1215_v63 = vpop.f32.mrb[4].mxu0  ;;  %v1261_v0 = vpop.f32.mrb[4].mxu1 }
 0x253   : > { %v3299_v2 = vpop.f32.mrb[5].mxu0  ;;  %v3305_v3 = vpop.f32.mrb[5].mxu1  ;;  %v1362_v4 = vsel %vm1174_vm2, %v1261_v0, -inf  ;;  %v1359_v6 = vsel %vm1174_vm2, %v1215_v63, -inf }
 0x254   : > { %1363 = vmax.xlane.f32.xlu1 %v1362_v4  ;;  %v1264_v7 = vpop.f32.mrb[6].mxu1  ;;  %1360 = vmax.xlane.f32.xlu0 %v1359_v6  ;;  %v1218_v8 = vpop.f32.mrb[6].mxu0 }
 0x255   : > { %v3300_v9 = vpop.f32.mrb[7].mxu0  ;;  %v3306_v10 = vpop.f32.mrb[7].mxu1 }
 0x25a   : > { %v1307_v12 = vpop.f32.mrb[8].mxu0  ;;  %v1353_v13 = vpop.f32.mrb[8].mxu1 }
 0x25b   : > { %v3311_v14 = vpop.f32.mrb[9].mxu0  ;;  %v3317_v15 = vpop.f32.mrb[9].mxu1  ;;  %v1365_v16 = vsel %vm1174_vm2, %v1307_v12, -inf  ;;  %v1368_v21 = vsel %vm1174_vm2, %v1353_v13, -inf }
 0x25c   : > { %v1356_v17 = vpop.f32.mrb[10].mxu1  ;;  %1366 = vmax.xlane.f32.xlu0 %v1365_v16  ;;  %v1310_v18 = vpop.f32.mrb[10].mxu0 }
 0x25d   : > { %v3312_v19 = vpop.f32.mrb[11].mxu0  ;;  %v3318_v20 = vpop.f32.mrb[11].mxu1 }
 0x260   : > { %1369 = vmax.xlane.f32.xlu0 %v1368_v21 }
 0x265   : > { %1022 = vrot.lane.b32.xlu1 %v3656_v11, %s3505_s2 }
 0x2e1   : > { %v1364_v22 = vpop.xlane.xlu1 %1363  ;;  %v1361_v23 = vpop.xlane.xlu0 %1360 }
 0x2e2   : > { %v1372_v24 = vsub.f32 %v1261_v0, %v1364_v22  ;;  %v1371_v25 = vsub.f32 %v1215_v63, %v1361_v23 }
 0x2e4   : > { %v1377_v28 = vmul.f32 1.442695, %v1372_v24  ;;  %v1375_v30 = vmul.f32 1.442695, %v1371_v25 }
 0x2e6   : > { %3454 = vpow2.f32 %v1377_v28 }
 0x2e7   : > { %3456 = vpow2.f32 %v1375_v30 }
 0x2e9   : > { %v1367_v11 = vpop.xlane.xlu0 %1366 }
 0x2ea   : > { %v1373_v37 = vsub.f32 %v1307_v12, %v1367_v11 }
 0x2ec   : > { %v1379_v39 = vmul.f32 1.442695, %v1373_v37 }
 0x2ed   : > { %v1370_v38 = vpop.xlane.xlu0 %1369 }
 0x2ee   : > { %v1374_v40 = vsub.f32 %v1353_v13, %v1370_v38  ;;  %3458 = vpow2.f32 %v1379_v39 }
 0x2f0   : > { %v3743_v31 = vpop.eup %3454  ;;  %v1381_v41 = vmul.f32 1.442695, %v1374_v40 }
 0x2f1   : > { %v3745_v33 = vpop.eup %3456  ;;  %v1386_v34 = vsel %vm1174_vm2, %v3743_v31, 0.0 }
 0x2f2   : > { %v1383_v35 = vsel %vm1174_vm2, %v3745_v33, 0.0  ;;  %1387 = vadd.xlane.f32.xlu0 %v1386_v34  ;;  %3460 = vpow2.f32 %v1381_v41 }
 0x2f3   : > { %1384 = vadd.xlane.f32.xlu1 %v1383_v35 }
 0x2f8   : > { %v3757_v42 = vpop.eup %3458 }
 0x2f9   : > { %v1389_v43 = vsel %vm1174_vm2, %v3757_v42, 0.0 }
 0x304   : > { %1026 = vrot.lane.b32.xlu1 %v3677_v32, %s3505_s2  ;;  %v3761_v32 = vpop.eup %3460 }
 0x308   : > { %1028 = vrot.lane.b32.xlu1 %v3667_v26, %s3505_s2  ;;  %1024 = vrot.lane.b32.xlu0 %v3669_v27, %s3505_s2  ;;  %v1392_v26 = vsel %vm1174_vm2, %v3761_v32, 0.0  ;;  %v1023_v27 = vpop.permute.xlu1 %1022 }
 0x327   : > { %1390 = vadd.xlane.f32.xlu0 %v1389_v43 }
 0x32c   : > { %1393 = vadd.xlane.f32.xlu1 %v1392_v26 }
 0x37f   : > { %v1388_v45 = vpop.xlane.xlu0 %1387 }
 0x380   : > { %v1385_v44 = vpop.xlane.xlu1 %1384  ;;  %3462 = vrcp.f32 %v1388_v45 }
 0x381   : > { %3464 = vrcp.f32 %v1385_v44 }
 0x383   : > { %v1025_v49 = vpop.permute.xlu0 %1024 }
 0x384   : > { %v1027_v46 = vpop.permute.xlu1 %1026 }
 0x385   : > { %v1034_v47 = vcombine.low %v1023_v27, %v1027_v46  ;;  %v1035_v48 = vcombine.high %v1023_v27, %v1027_v46 }
 0x387   : > { %v1042_v53 = vrot.slane %v1034_v47, %v3671_v29  ;;  %v1049_v54 = vrot.slane %v1035_v48, %v3671_v29 }
 0x388   : > { %v1029_v50 = vpop.permute.xlu1 %1028 }
 0x389   : > { %v1050_v51 = vcombine.low %v1025_v49, %v1029_v50  ;;  %v1051_v52 = vcombine.high %v1025_v49, %v1029_v50 }
 0x38a   : > { %v3463_v16 = vpop.eup %3462 }
 0x38b   : > { %v1058_v55 = vrot.slane %v1050_v51, %v3671_v29  ;;  %v1065_v56 = vrot.slane %v1051_v52, %v3671_v29  ;;  %v3465_v21 = vpop.eup %3464  ;;  %v1400_v30 = vmul.f32 %v3463_v16, %v3743_v31 }
 0x38c   : > { %v1399_v28 = vmul.f32 %v3465_v21, %v3745_v33 }
 0x38d   : > { %v1066_v57 = vcombine.low %v1042_v53, %v1058_v55  ;;  %v1067_v58 = vcombine.high %v1042_v53, %v1058_v55  ;;  %v1082_v59 = vcombine.low %v1049_v54, %v1065_v56  ;;  %v1083_v60 = vcombine.high %v1049_v54, %v1065_v56 }
 0x38e   : > { %v1403_v40 = vpack.c.bf16 %v1399_v28, %v1399_v28  ;;  %v1404_v41 = vpack.c.bf16 %v1400_v30, %v1400_v30 }
 0x38f   : > { %v1074_v61 = vrot.slane %v1066_v57, %v3683_v36  ;;  %v1081_v62 = vrot.slane %v1067_v58, %v3683_v36  ;;  %v1090_v63 = vrot.slane %v1082_v59, %v3683_v36  ;;  %v1097_v0 = vrot.slane %v1083_v60, %v3683_v36 }
 0x391   : > { %v1102_v2 = vcombine.low %v1074_v61, %v1081_v62  ;;  %v3179_v3 = vcombine.high %v1074_v61, %v1081_v62  ;;  %v1118_v4 = vcombine.low %v1090_v63, %v1097_v0  ;;  %v3180_v6 = vcombine.high %v1090_v63, %v1097_v0 }
 0x393   : > { %v1109_v7 = vrot.slane %v1102_v2, %v3671_v29  ;;  %v1117_v8 = vrot.slane %v3179_v3, %v3671_v29  ;;  %v1125_v9 = vrot.slane %v1118_v4, %v3671_v29  ;;  %v1133_v10 = vrot.slane %v3180_v6, %v3671_v29 }
 0x395   : > { %v1134_v12 = vcombine.low %v1109_v7, %v1117_v8  ;;  %v1150_v13 = vcombine.low %v1125_v9, %v1133_v10  ;;  %v1135_v14 = vcombine.high %v1109_v7, %v1117_v8  ;;  %v1151_v15 = vcombine.high %v1125_v9, %v1133_v10 }
 0x397   : > { %v1142_v17 = vrot.slane %v1134_v12, %v3683_v36  ;;  %v1158_v18 = vrot.slane %v1150_v13, %v3683_v36  ;;  %v1149_v19 = vrot.slane %v1135_v14, %v3683_v36  ;;  %v1165_v20 = vrot.slane %v1151_v15, %v3683_v36  ;;  %v3446_v14 = vld [vmem:[%s4092_s6] sm:$0xff]  }
 0x399   : > { %v1166_v22 = vcombine.low %v1142_v17, %v1158_v18  ;;  %v1167_v23 = vcombine.high %v1142_v17, %v1158_v18  ;;  %v1168_v24 = vcombine.low %v1149_v19, %v1165_v20  ;;  %v1169_v25 = vcombine.high %v1149_v19, %v1165_v20 }
 0x39b   : > { %v1170_v34 = vpack.c.bf16 %v1166_v22, %v1166_v22  ;;  %v1171_v35 = vpack.c.bf16 %v1167_v23, %v1167_v23  ;;  %v1172_v38 = vpack.c.bf16 %v1168_v24, %v1168_v24  ;;  %v1173_v39 = vpack.c.bf16 %v1169_v25, %v1169_v25  ;;  %v3447_v23 = vld [vmem:[%s4092_s6 + $0x8] sm:$0xff]  }
 0x39d   : > { %v1412_v11 = vsel %vm1410_vm3, %v1170_v34, 0  ;;  %v1458_v37 = vsel %vm1410_vm3, %v1171_v35, 0  ;;  %v1504_v31 = vsel %vm1410_vm3, %v1172_v38, 0  ;;  %v1550_v33 = vsel %vm1410_vm3, %v1173_v39, 0 }
 0x39e   : > { %3320 = vmatpush3.bf16.msra.mxu0 %v1412_v11  ;;  %3326 = vmatpush3.bf16.msra.mxu1 %v1458_v37 }
 0x39f   : > { %3331 = vmatprep.subr.bf16.mxu0 %v3498_v1  ;;  %3337 = vmatprep.subr.bf16.mxu1 %v3498_v1 }
 0x3a1   : > { %3322 = vmatmul.mubr.msk.bf16.vlgmr.msra.gmra.mrb[12].mxu0 %vm1174_vm2, %v1403_v40  ;;  %3328 = vmatmul.mubr.msk.bf16.vlgmr.msra.gmra.mrb[12].mxu1 %vm1174_vm2, %v1404_v41 }
 0x3a2   : > { %3332 = vmatpush3.bf16.msra.mxu0 %v1504_v31  ;;  %3338 = vmatpush3.bf16.msra.mxu1 %v1550_v33 }
 0x3a3   : > { %3333 = vmatprep.mubr.msk.bf16.mxu0 %vm3499_vm0, %v3498_v1  ;;  %3339 = vmatprep.mubr.msk.bf16.mxu1 %vm3499_vm0, %v3498_v1 }
 0x3a4   : > { %3343 = vmatprep.subr.bf16.mxu0 %v3498_v1  ;;  %3351 = vmatprep.subr.bf16.mxu1 %v3498_v1 }
 0x3b4   : > { %v1391_v43 = vpop.xlane.xlu0 %1390 }
 0x3b5   : > { %3466 = vrcp.f32 %v1391_v43 }
 0x3b9   : > { %v1394_v26 = vpop.xlane.xlu1 %1393 }
 0x3ba   : > { %3468 = vrcp.f32 %v1394_v26 }
 0x3bf   : > { %v3467_v27 = vpop.eup %3466 }
 0x3c0   : > { %v1401_v44 = vmul.f32 %v3467_v27, %v3757_v42 }
 0x3c2   : > { %v1405_v45 = vpack.c.bf16 %v1401_v44, %v1401_v44 }
 0x3c4   : > { %v3469_v46 = vpop.eup %3468  ;;  %3334 = vmatmul.mubr.msk.bf16.vlgmr.msra.gmra.mrb[16].mxu0 %vm1174_vm2, %v1405_v45 }
 0x3c5   : > { %v1402_v47 = vmul.f32 %v3469_v46, %v3761_v32  ;;  %3347 = vmatprep.mubr.msk.bf16.mxu0 %vm3499_vm0, %v3498_v1  ;;  %3344 = vmatpush3.bf16.msra.mxu0 %v3446_v14 }
 0x3c6   : > { %3345 = vmatprep.subr.bf16.mxu0 %v3498_v1 }
 0x3c7   : > { %v1406_v48 = vpack.c.bf16 %v1402_v47, %v1402_v47 }
 0x3c9   : > { %3340 = vmatmul.mubr.msk.bf16.vlgmr.msra.gmra.mrb[16].mxu1 %vm1174_vm2, %v1406_v48  ;;  %3346 = vmatpush3.bf16.msra.mxu0 %v3447_v23 }
 0x3ca   : > { %3355 = vmatprep.mubr.msk.bf16.mxu1 %vm3499_vm0, %v3498_v1  ;;  %3359 = vmatprep.subr.bf16.mxu0 %v3498_v1 }
 0x474   : > { %v1448_v49 = vpop.f32.mrb[12].mxu0  ;;  %v1494_v50 = vpop.f32.mrb[12].mxu1 }
 0x475   : > { %v3323_v51 = vpop.f32.mrb[13].mxu0  ;;  %v3329_v52 = vpop.f32.mrb[13].mxu1 }
 0x476   : > { %v1451_v42 = vpop.f32.mrb[14].mxu0  ;;  %v1497_v53 = vpop.f32.mrb[14].mxu1 }
 0x477   : > { %v3324_v54 = vpop.f32.mrb[15].mxu0  ;;  %v3330_v55 = vpop.f32.mrb[15].mxu1 }
 0x497   : > { %v1540_v56 = vpop.f32.mrb[16].mxu0 }
 0x498   : > { %v1592_v57 = vcombine.low %v1448_v49, %v1540_v56  ;;  %v1593_v32 = vcombine.high %v1448_v49, %v1540_v56  ;;  %v3335_v58 = vpop.f32.mrb[17].mxu0 }
 0x499   : > { %v1543_v59 = vpop.f32.mrb[18].mxu0 }
 0x49a   : > { %v3336_v60 = vpop.f32.mrb[19].mxu0  ;;  %v1600_v3 = vrot.slane %v1592_v57, %v3671_v29  ;;  %v1607_v4 = vrot.slane %v1593_v32, %v3671_v29  ;;  %v3448_v57 = vld [vmem:[%s4098_s12] sm:$0xff]   ;;  %v3449_v32 = vld [vmem:[%s4098_s12 + $0x8] sm:$0xff]  }
 0x49c   : > { %v1586_v61 = vpop.f32.mrb[16].mxu1 }
 0x49d   : > { %v1608_v62 = vcombine.low %v1494_v50, %v1586_v61  ;;  %v1609_v63 = vcombine.high %v1494_v50, %v1586_v61  ;;  %v3341_v0 = vpop.f32.mrb[17].mxu1  ;;  %v3191_v50 = vld [vmem:[%s4093_s7] ss:$0 sm:$0xff] }
 0x49e   : > { %v1589_v2 = vpop.f32.mrb[18].mxu1  ;;  %v3450_v0 = vld [vmem:[%s4096_s10] sm:$0xff]  }
 0x49f   : > { %v1616_v6 = vrot.slane %v1608_v62, %v3671_v29  ;;  %v1623_v7 = vrot.slane %v1609_v63, %v3671_v29  ;;  %v3342_v8 = vpop.f32.mrb[19].mxu1  ;;  %3352 = vmatpush3.bf16.msra.mxu1 %v3450_v0  ;;  %v3451_v2 = vld [vmem:[%s4096_s10 + $0x8] sm:$0xff]   ;;  %v3197_v0 = vld [vmem:[%s4097_s11] ss:$0 sm:$0xff] }
 0x4a0   : > { %3353 = vmatprep.subr.bf16.mxu1 %v3498_v1 }
 0x4a1   : > { %v1624_v9 = vcombine.low %v1600_v3, %v1616_v6  ;;  %v1625_v10 = vcombine.high %v1600_v3, %v1616_v6  ;;  %v1640_v12 = vcombine.low %v1607_v4, %v1623_v7  ;;  %v1641_v13 = vcombine.high %v1607_v4, %v1623_v7  ;;  %v3201_v3 = vld [vmem:[%s4099_s13] ss:$0 sm:$0xff] }
 0x4a3   : > { %v1632_v15 = vrot.slane %v1624_v9, %v3683_v36  ;;  %v1639_v16 = vrot.slane %v1625_v10, %v3683_v36  ;;  %v1648_v17 = vrot.slane %v1640_v12, %v3683_v36  ;;  %v1655_v18 = vrot.slane %v1641_v13, %v3683_v36  ;;  %3354 = vmatpush3.bf16.msra.mxu1 %v3451_v2 }
 0x4a4   : > { %3367 = vmatprep.subr.bf16.mxu1 %v3498_v1 }
 0x4a5   : > { %v1660_v19 = vcombine.low %v1632_v15, %v1639_v16  ;;  %v3189_v20 = vcombine.high %v1632_v15, %v1639_v16  ;;  %v1676_v21 = vcombine.low %v1648_v17, %v1655_v18  ;;  %v3190_v22 = vcombine.high %v1648_v17, %v1655_v18  ;;  %v3195_v15 = vld [vmem:[%s4094_s8] ss:$0 sm:$0xff] }
 0x4a6   : > { %v3196_v17 = vld [vmem:[%s4095_s9] ss:$0 sm:$0xff] }
 0x4a7   : > { %v1667_v24 = vrot.slane %v1660_v19, %v3671_v29  ;;  %v1675_v25 = vrot.slane %v3189_v20, %v3671_v29  ;;  %v1683_v28 = vrot.slane %v1676_v21, %v3671_v29  ;;  %v1691_v30 = vrot.slane %v3190_v22, %v3671_v29 }
 0x4a9   : > { %v1693_v34 = vcombine.high %v1667_v24, %v1675_v25  ;;  %v1709_v35 = vcombine.high %v1683_v28, %v1691_v30  ;;  %v1692_v11 = vcombine.low %v1667_v24, %v1675_v25  ;;  %v1708_v37 = vcombine.low %v1683_v28, %v1691_v30 }
 0x4ab   : > { %v1707_v38 = vrot.slane %v1693_v34, %v3683_v36  ;;  %v1723_v39 = vrot.slane %v1709_v35, %v3683_v36  ;;  %v1700_v40 = vrot.slane %v1692_v11, %v3683_v36  ;;  %v1716_v41 = vrot.slane %v1708_v37, %v3683_v36 }
 0x4ad   : > { %v1726_v31 = vcombine.low %v1707_v38, %v1723_v39  ;;  %v1725_v33 = vcombine.high %v1700_v40, %v1716_v41  ;;  %v1727_v43 = vcombine.high %v1707_v38, %v1723_v39  ;;  %v1724_v26 = vcombine.low %v1700_v40, %v1716_v41 }
 0x4af   : > { %1733 = vrot.lane.b32.xlu1 %v1726_v31, %s4108_s28  ;;  %1729 = vrot.lane.b32.xlu0 %v1725_v33, %s4107_s30  ;;  %s4114_s30 = sld [smem:[#allocation3_spill]] }
 0x4b3   : > { %1737 = vrot.lane.b32.xlu0 %v1727_v43, %s4106_s0 }
 0x4b5   : > { %s583_s28 = scalar_lea.vmem %s4114_s30, %s3632_s23 }
 0x4b6   : > { %v590_v58 = vld [vmem:[%s583_s28] sm:$0xff] }
 0x521   : > { %v1730_v27 = vpop.permute.xlu0 %1729  ;;  %v1734_v44 = vpop.permute.xlu1 %1733 }
 0x522   : > { %v1740_v45 = vsel %vm1174_vm2, %v1724_v26, %v1730_v27 }
 0x523   : > { %v1742_v47 = vsel %vm1741_vm4, %v1740_v45, %v1734_v44 }
 0x525   : > { %v1738_v46 = vpop.permute.xlu0 %1737 }
 0x526   : > { %v1744_v48 = vsel %vm1743_vm5, %v1742_v47, %v1738_v46 }
 0x527   : > { %v1745_v49 = vpack.c.bf16 %v1744_v48, %v1744_v48 }
 0x529   : > { %3348 = vmatmul.mubr.msk.bf16.vlgmr.msra.gmra.mrb[20].mxu0 %vm615_vm1, %v1745_v49 }
 0x52a   : > { %3363 = vmatprep.mubr.msk.bf16.mxu0 %vm3499_vm0, %v3498_v1  ;;  %3360 = vmatpush3.bf16.msra.mxu0 %v3448_v57 }
 0x52b   : > { %3361 = vmatprep.subr.bf16.mxu0 %v3498_v1 }
 0x52e   : > { %3362 = vmatpush3.bf16.msra.mxu0 %v3449_v32 }
 0x52f   : > { %3373 = vmatprep.subr.bf16.mxu0 %v3498_v1 }
 0x5fc   : > { %v1806_v51 = vpop.f32.mrb[20].mxu0 }
 0x5fd   : > { %v1807_v52 = vadd.f32 %v3191_v50, %v1806_v51  ;;  %v3349_v42 = vpop.f32.mrb[21].mxu0 }
 0x5fe   : > { %v1809_v53 = vpop.f32.mrb[22].mxu0 }
 0x5ff   : > { %v3350_v54 = vpop.f32.mrb[23].mxu0  ;;  %v1812_v55 = vadd.f32 %v1807_v52, %v3639_v5  ;;  %v1844_v5 = vpack.c.bf16 %v590_v58, %v590_v58 }
 0x601   : > { %v1813_v56 = vsel %vm615_vm1, %v1812_v55, 0.0  ;;  %3364 = vmatmul.mubr.msk.bf16.vlgmr.msra.gmra.mrb[24].mxu0 %vm615_vm1, %v1844_v5 }
 0x602   : > { %1814 = vadd.xlane.f32.xlu1 %v1813_v56  ;;  %3375 = vmatprep.mubr.msk.bf16.mxu0 %vm3499_vm0, %v3498_v1 }
 0x68f   : > { %v1815_v59 = vpop.xlane.xlu1 %1814 }
 0x690   : > { %v1817_v60 = vmul.f32 0.03125, %v1815_v59 }
 0x692   : > { %v1818_v61 = vsub.f32 %v1812_v55, %v1817_v60 }
 0x694   : > { %v1819_v62 = vmul.f32 %v1818_v61, %v1818_v61 }
 0x696   : > { %v1820_v63 = vsel %vm615_vm1, %v1819_v62, 0.0 }
 0x697   : > { %1821 = vadd.xlane.f32.xlu0 %v1820_v63 }
 0x6d4   : > { %v1971_v4 = vpop.f32.mrb[24].mxu0 }
 0x6d5   : > { %v3870_v6 = vadd.f32 %v3201_v3, %v1971_v4  ;;  %v3365_v7 = vpop.f32.mrb[25].mxu0 }
 0x6d6   : > { %v1974_v8 = vpop.f32.mrb[26].mxu0 }
 0x6d7   : > { %2131 = vrot.lane.b32.xlu1 %v3870_v6, %s3502_s22  ;;  %2128 = vrot.lane.b32.xlu0 %v3870_v6, %s3501_s21  ;;  %v3366_v9 = vpop.f32.mrb[27].mxu0 }
 0x6db   : > { %2134 = vrot.lane.b32.xlu1 %v3870_v6, %s3500_s20 }
 0x724   : > { %v1822_v10 = vpop.xlane.xlu0 %1821 }
 0x725   : > { %v1823_v12 = vmul.f32 0.03125, %v1822_v10 }
 0x727   : > { %v1824_v13 = vadd.f32 1e-05, %v1823_v12 }
 0x729   : > { %3470 = vrsqrt.f32 %v1824_v13 }
 0x733   : > { %v3471_v14 = vpop.eup %3470 }
 0x734   : > { %v1826_v16 = vmul.f32 %v3471_v14, %v1818_v61 }
 0x736   : > { %v1834_v18 = vmul.f32 %v3195_v15, %v1826_v16 }
 0x738   : > { %v3884_v19 = vadd.f32 %v3196_v17, %v1834_v18 }
 0x73a   : > { %v1843_v20 = vpack.c.bf16 %v3884_v19, %v3884_v19 }
 0x73c   : > { %3356 = vmatmul.mubr.msk.bf16.vlgmr.msra.gmra.mrb[20].mxu1 %vm615_vm1, %v1843_v20 }
 0x73d   : > { %3369 = vmatprep.mubr.msk.bf16.mxu1 %vm3499_vm0, %v3498_v1 }
 0x749   : > { %v3891_v21 = vpop.permute.xlu1 %2131  ;;  %v3895_v23 = vpop.permute.xlu0 %2128 }
 0x74a   : > { %v2137_v24 = vcombine.low %v3870_v6, %v3891_v21  ;;  %v2138_v25 = vcombine.high %v3870_v6, %v3891_v21 }
 0x74c   : > { %v2145_v34 = vrot.slane %v2137_v24, %v3671_v29  ;;  %v2152_v35 = vrot.slane %v2138_v25, %v3671_v29 }
 0x74d   : > { %v3893_v22 = vpop.permute.xlu1 %2134 }
 0x74e   : > { %v2153_v28 = vcombine.low %v3895_v23, %v3893_v22  ;;  %v2154_v30 = vcombine.high %v3895_v23, %v3893_v22 }
 0x750   : > { %v2161_v11 = vrot.slane %v2153_v28, %v3671_v29  ;;  %v2168_v37 = vrot.slane %v2154_v30, %v3671_v29 }
 0x752   : > { %v2169_v38 = vcombine.low %v2145_v34, %v2161_v11  ;;  %v2170_v39 = vcombine.high %v2145_v34, %v2161_v11  ;;  %v2185_v40 = vcombine.low %v2152_v35, %v2168_v37  ;;  %v2186_v41 = vcombine.high %v2152_v35, %v2168_v37 }
 0x754   : > { %v2177_v31 = vrot.slane %v2169_v38, %v3683_v36  ;;  %v2184_v33 = vrot.slane %v2170_v39, %v3683_v36  ;;  %v2193_v43 = vrot.slane %v2185_v40, %v3683_v36  ;;  %v2200_v26 = vrot.slane %v2186_v41, %v3683_v36 }
 0x756   : > { %v2205_v27 = vcombine.low %v2177_v31, %v2184_v33  ;;  %v3207_v44 = vcombine.high %v2177_v31, %v2184_v33  ;;  %v2221_v45 = vcombine.low %v2193_v43, %v2200_v26  ;;  %v3208_v46 = vcombine.high %v2193_v43, %v2200_v26 }
 0x758   : > { %v2212_v47 = vrot.slane %v2205_v27, %v3671_v29  ;;  %v2220_v48 = vrot.slane %v3207_v44, %v3671_v29  ;;  %v2228_v49 = vrot.slane %v2221_v45, %v3671_v29  ;;  %v2236_v50 = vrot.slane %v3208_v46, %v3671_v29 }
 0x75a   : > { %v2237_v51 = vcombine.low %v2212_v47, %v2220_v48  ;;  %v2253_v52 = vcombine.low %v2228_v49, %v2236_v50  ;;  %v2238_v42 = vcombine.high %v2212_v47, %v2220_v48  ;;  %v2254_v53 = vcombine.high %v2228_v49, %v2236_v50 }
 0x75c   : > { %v2245_v54 = vrot.slane %v2237_v51, %v3683_v36  ;;  %v2261_v55 = vrot.slane %v2253_v52, %v3683_v36  ;;  %v2252_v56 = vrot.slane %v2238_v42, %v3683_v36  ;;  %v2268_v57 = vrot.slane %v2254_v53, %v3683_v36 }
 0x75e   : > { %v2269_v32 = vcombine.low %v2245_v54, %v2261_v55  ;;  %v2270_v58 = vcombine.high %v2245_v54, %v2261_v55  ;;  %v3921_v5 = vcombine.low %v2252_v56, %v2268_v57  ;;  %v3923_v59 = vcombine.high %v2252_v56, %v2268_v57 }
 0x760   : > { %v2273_v60 = vpack.c.bf16 %v2269_v32, %v2269_v32  ;;  %v2274_v61 = vpack.c.bf16 %v2270_v58, %v2270_v58  ;;  %v2275_v52 = vpack.c.bf16 %v3921_v5, %v3921_v5  ;;  %v2276_v42 = vpack.c.bf16 %v3923_v59, %v3923_v59 }
 0x762   : > { %v2433_v62 = vsel %vm1174_vm2, %v2273_v60, 0  ;;  %v2479_v63 = vsel %vm1174_vm2, %v2274_v61, 0  ;;  %v2525_v57 = vsel %vm1174_vm2, %v2275_v52, 0  ;;  %v2571_v32 = vsel %vm1174_vm2, %v2276_v42, 0 }
 0x763   : > { %3368 = vmatpush3.bf16.xpose.msra.mxu1 %v2433_v62  ;;  %3374 = vmatpush3.bf16.xpose.msra.mxu0 %v2479_v63 }
 0x764   : > { %3379 = vmatprep.subr.bf16.mxu1 %v3498_v1  ;;  %3385 = vmatprep.subr.bf16.mxu0 %v3498_v1 }
 0x80f   : > { %v1905_v2 = vpop.f32.mrb[20].mxu1 }
 0x810   : > { %v1906_v3 = vadd.f32 %v3197_v0, %v1905_v2  ;;  %v3357_v4 = vpop.f32.mrb[21].mxu1 }
 0x811   : > { %v1908_v7 = vpop.f32.mrb[22].mxu1 }
 0x812   : > { %v3358_v8 = vpop.f32.mrb[23].mxu1  ;;  %1981 = vrot.lane.b32.xlu1 %v1906_v3, %s3502_s22  ;;  %1978 = vrot.lane.b32.xlu0 %v1906_v3, %s3501_s21 }
 0x816   : > { %1984 = vrot.lane.b32.xlu0 %v1906_v3, %s3500_s20 }
 0x884   : > { %v1982_v9 = vpop.permute.xlu1 %1981  ;;  %v1979_v10 = vpop.permute.xlu0 %1978 }
 0x885   : > { %v1987_v12 = vcombine.low %v1906_v3, %v1982_v9  ;;  %v1988_v13 = vcombine.high %v1906_v3, %v1982_v9 }
 0x887   : > { %v1995_v17 = vrot.slane %v1987_v12, %v3671_v29  ;;  %v2002_v18 = vrot.slane %v1988_v13, %v3671_v29 }
 0x888   : > { %v1985_v14 = vpop.permute.xlu0 %1984 }
 0x889   : > { %v2003_v15 = vcombine.low %v1979_v10, %v1985_v14  ;;  %v2004_v16 = vcombine.high %v1979_v10, %v1985_v14 }
 0x88b   : > { %v2011_v20 = vrot.slane %v2003_v15, %v3671_v29  ;;  %v2018_v24 = vrot.slane %v2004_v16, %v3671_v29 }
 0x88d   : > { %v2019_v25 = vcombine.low %v1995_v17, %v2011_v20  ;;  %v2020_v28 = vcombine.high %v1995_v17, %v2011_v20  ;;  %v2035_v30 = vcombine.low %v2002_v18, %v2018_v24  ;;  %v2036_v34 = vcombine.high %v2002_v18, %v2018_v24 }
 0x88f   : > { %v2027_v35 = vrot.slane %v2019_v25, %v3683_v36  ;;  %v2034_v11 = vrot.slane %v2020_v28, %v3683_v36  ;;  %v2043_v37 = vrot.slane %v2035_v30, %v3683_v36  ;;  %v2050_v38 = vrot.slane %v2036_v34, %v3683_v36 }
 0x891   : > { %v2055_v39 = vcombine.low %v2027_v35, %v2034_v11  ;;  %v3205_v40 = vcombine.high %v2027_v35, %v2034_v11  ;;  %v2071_v41 = vcombine.low %v2043_v37, %v2050_v38  ;;  %v3206_v31 = vcombine.high %v2043_v37, %v2050_v38 }
 0x893   : > { %v2062_v33 = vrot.slane %v2055_v39, %v3671_v29  ;;  %v2070_v43 = vrot.slane %v3205_v40, %v3671_v29  ;;  %v2078_v26 = vrot.slane %v2071_v41, %v3671_v29  ;;  %v2086_v27 = vrot.slane %v3206_v31, %v3671_v29 }
 0x895   : > { %v2087_v44 = vcombine.low %v2062_v33, %v2070_v43  ;;  %v2103_v45 = vcombine.low %v2078_v26, %v2086_v27  ;;  %v2088_v46 = vcombine.high %v2062_v33, %v2070_v43  ;;  %v2104_v47 = vcombine.high %v2078_v26, %v2086_v27 }
 0x897   : > { %v2095_v48 = vrot.slane %v2087_v44, %v3683_v36  ;;  %v2111_v49 = vrot.slane %v2103_v45, %v3683_v36  ;;  %v2102_v55 = vrot.slane %v2088_v46, %v3683_v36  ;;  %v2118_v56 = vrot.slane %v2104_v47, %v3683_v36 }
 0x899   : > { %v2119_v50 = vcombine.low %v2095_v48, %v2111_v49  ;;  %v2120_v51 = vcombine.high %v2095_v48, %v2111_v49  ;;  %v2121_v58 = vcombine.low %v2102_v55, %v2118_v56  ;;  %v2122_v5 = vcombine.high %v2102_v55, %v2118_v56 }
 0x89b   : > { %v2123_v53 = vpack.c.bf16 %v2119_v50, %v2119_v50  ;;  %v2124_v54 = vpack.c.bf16 %v2120_v51, %v2120_v51  ;;  %v2125_v59 = vpack.c.bf16 %v2121_v58, %v2121_v58  ;;  %v2126_v60 = vpack.c.bf16 %v2122_v5, %v2122_v5 }
 0x89d   : > { %3370 = vmatmul.mubr.msk.bf16.vlgmr.msra.gmra.mrb[24].mxu1 %vm1174_vm2, %v2123_v53  ;;  %3376 = vmatmul.mubr.msk.bf16.vlgmr.msra.gmra.mrb[28].mxu0 %vm1174_vm2, %v2124_v54 }
 0x89e   : > { %3380 = vmatpush3.bf16.xpose.msra.mxu1 %v2525_v57  ;;  %3386 = vmatpush3.bf16.xpose.msra.mxu0 %v2571_v32 }
 0x89f   : > { %3381 = vmatprep.mubr.msk.bf16.mxu1 %vm3499_vm0, %v3498_v1  ;;  %3387 = vmatprep.mubr.msk.bf16.mxu0 %vm3499_vm0, %v3498_v1 }
 0x8a0   : > { %3391 = vmatprep.subr.bf16.mxu1 %v3498_v1  ;;  %3397 = vmatprep.subr.bf16.mxu0 %v3498_v1 }
 0x8a5   : > { %3382 = vmatmul.mubr.msk.bf16.vlgmr.msra.gmra.mrb[28].mxu1 %vm1174_vm2, %v2125_v59  ;;  %3388 = vmatmul.mubr.msk.bf16.vlgmr.msra.gmra.mrb[32].mxu0 %vm1174_vm2, %v2126_v60 }
 0x8a6   : > { %3393 = vmatprep.mubr.msk.bf16.mxu1 %vm3499_vm0, %v3498_v1  ;;  %3399 = vmatprep.mubr.msk.bf16.mxu0 %vm3499_vm0, %v3498_v1 }
 0x970   : > { %v2469_v61 = vpop.f32.mrb[24].mxu1  ;;  %v2515_v62 = vpop.f32.mrb[28].mxu0 }
 0x971   : > { %v3371_v63 = vpop.f32.mrb[25].mxu1  ;;  %v3377_v0 = vpop.f32.mrb[29].mxu0  ;;  %v2613_v2 = vsel %vm1174_vm2, %v2469_v61, -inf  ;;  %v2616_v3 = vsel %vm1174_vm2, %v2515_v62, -inf }
 0x972   : > { %2614 = vmax.xlane.f32.xlu1 %v2613_v2  ;;  %v2472_v4 = vpop.f32.mrb[26].mxu1  ;;  %2617 = vmax.xlane.f32.xlu0 %v2616_v3  ;;  %v2518_v7 = vpop.f32.mrb[30].mxu0 }
 0x973   : > { %v3372_v8 = vpop.f32.mrb[27].mxu1  ;;  %v3378_v9 = vpop.f32.mrb[31].mxu0 }
 0x978   : > { %v2561_v10 = vpop.f32.mrb[28].mxu1  ;;  %v2607_v12 = vpop.f32.mrb[32].mxu0 }
 0x979   : > { %v3383_v13 = vpop.f32.mrb[29].mxu1  ;;  %v3389_v14 = vpop.f32.mrb[33].mxu0  ;;  %v2619_v15 = vsel %vm1174_vm2, %v2561_v10, -inf  ;;  %v2622_v16 = vsel %vm1174_vm2, %v2607_v12, -inf }
 0x97a   : > { %v2564_v17 = vpop.f32.mrb[30].mxu1  ;;  %2620 = vmax.xlane.f32.xlu0 %v2619_v15  ;;  %2623 = vmax.xlane.f32.xlu1 %v2622_v16  ;;  %v2610_v18 = vpop.f32.mrb[34].mxu0 }
 0x97b   : > { %v3384_v20 = vpop.f32.mrb[31].mxu1  ;;  %v3390_v24 = vpop.f32.mrb[35].mxu0 }
 0x98b   : > { %2279 = vrot.lane.b32.xlu1 %v3895_v23, %s3505_s2 }
 0x990   : > { %2277 = vrot.lane.b32.xlu0 %v3870_v6, %s3505_s2 }
 0x9ff   : > { %v2615_v25 = vpop.xlane.xlu1 %2614  ;;  %v2618_v28 = vpop.xlane.xlu0 %2617 }
 0xa00   : > { %v2625_v30 = vsub.f32 %v2469_v61, %v2615_v25  ;;  %v2626_v34 = vsub.f32 %v2515_v62, %v2618_v28 }
 0xa02   : > { %v2629_v35 = vmul.f32 1.442695, %v2625_v30  ;;  %v2631_v11 = vmul.f32 1.442695, %v2626_v34 }
 0xa04   : > { %3472 = vpow2.f32 %v2629_v35 }
 0xa05   : > { %3474 = vpow2.f32 %v2631_v11 }
 0xa07   : > { %v2624_v6 = vpop.xlane.xlu1 %2623  ;;  %v2621_v40 = vpop.xlane.xlu0 %2620 }
 0xa08   : > { %v2628_v41 = vsub.f32 %v2607_v12, %v2624_v6  ;;  %v2627_v31 = vsub.f32 %v2561_v10, %v2621_v40 }
 0xa0a   : > { %v2635_v33 = vmul.f32 1.442695, %v2628_v41  ;;  %v2633_v43 = vmul.f32 1.442695, %v2627_v31 }
 0xa0b   : > { %v2280_v45 = vpop.permute.xlu1 %2279 }
 0xa0c   : > { %3476 = vpow2.f32 %v2635_v33 }
 0xa0d   : > { %3478 = vpow2.f32 %v2633_v43 }
 0xa0e   : > { %v3979_v37 = vpop.eup %3472 }
 0xa0f   : > { %v3981_v38 = vpop.eup %3474  ;;  %v2637_v39 = vsel %vm1174_vm2, %v3979_v37, 0.0 }
 0xa10   : > { %2638 = vadd.xlane.f32.xlu0 %v2637_v39  ;;  %v2640_v23 = vsel %vm1174_vm2, %v3981_v38, 0.0 }
 0xa11   : > { %2641 = vadd.xlane.f32.xlu1 %v2640_v23 }
 0xa16   : > { %v3991_v26 = vpop.eup %3476 }
 0xa17   : > { %v3993_v27 = vpop.eup %3478  ;;  %v2646_v44 = vsel %vm1174_vm2, %v3991_v26, 0.0 }
 0xa22   : > { %2281 = vrot.lane.b32.xlu1 %v3891_v21, %s3505_s2  ;;  %v2643_v21 = vsel %vm1174_vm2, %v3993_v27, 0.0 }
 0xa26   : > { %2283 = vrot.lane.b32.xlu0 %v3893_v22, %s3505_s2  ;;  %v2278_v22 = vpop.permute.xlu0 %2277  ;;  %s587_s2 = scalar_lea.vmem %s4104_s18, %s3632_s23 }
 0xa45   : > { %2647 = vadd.xlane.f32.xlu0 %v2646_v44 }
 0xa46   : > { %2644 = vadd.xlane.f32.xlu1 %v2643_v21 }
 0xa9d   : > { %v2639_v46 = vpop.xlane.xlu0 %2638 }
 0xa9e   : > { %v2642_v47 = vpop.xlane.xlu1 %2641  ;;  %3480 = vrcp.f32 %v2639_v46 }
 0xa9f   : > { %3482 = vrcp.f32 %v2642_v47 }
 0xaa1   : > { %v2284_v48 = vpop.permute.xlu0 %2283 }
 0xaa2   : > { %v2305_v49 = vcombine.low %v2280_v45, %v2284_v48  ;;  %v2306_v50 = vcombine.high %v2280_v45, %v2284_v48  ;;  %v2282_v51 = vpop.permute.xlu1 %2281 }
 0xaa3   : > { %v2289_v52 = vcombine.low %v2278_v22, %v2282_v51  ;;  %v2290_v42 = vcombine.high %v2278_v22, %v2282_v51 }
 0xaa4   : > { %v2313_v53 = vrot.slane %v2305_v49, %v3671_v29  ;;  %v2320_v54 = vrot.slane %v2306_v50, %v3671_v29 }
 0xaa5   : > { %v2297_v55 = vrot.slane %v2289_v52, %v3671_v29  ;;  %v2304_v56 = vrot.slane %v2290_v42, %v3671_v29 }
 0xaa7   : > { %v2321_v57 = vcombine.low %v2297_v55, %v2313_v53  ;;  %v2322_v32 = vcombine.high %v2297_v55, %v2313_v53  ;;  %v2337_v58 = vcombine.low %v2304_v56, %v2320_v54  ;;  %v2338_v5 = vcombine.high %v2304_v56, %v2320_v54 }
 0xaa8   : > { %v3481_v17 = vpop.eup %3480 }
 0xaa9   : > { %v2329_v59 = vrot.slane %v2321_v57, %v3683_v36  ;;  %v2336_v60 = vrot.slane %v2322_v32, %v3683_v36  ;;  %v2345_v61 = vrot.slane %v2337_v58, %v3683_v36  ;;  %v2352_v62 = vrot.slane %v2338_v5, %v3683_v36  ;;  %v3483_v24 = vpop.eup %3482 }
 0xaaa   : > { %v2653_v35 = vmul.f32 %v3481_v17, %v3979_v37  ;;  %v2654_v11 = vmul.f32 %v3483_v24, %v3981_v38 }
 0xaab   : > { %v2357_v63 = vcombine.low %v2329_v59, %v2336_v60  ;;  %v3209_v0 = vcombine.high %v2329_v59, %v2336_v60  ;;  %v2373_v2 = vcombine.low %v2345_v61, %v2352_v62  ;;  %v3210_v3 = vcombine.high %v2345_v61, %v2352_v62 }
 0xaac   : > { %v2657_v33 = vpack.c.bf16 %v2653_v35, %v2653_v35  ;;  %v2658_v43 = vpack.c.bf16 %v2654_v11, %v2654_v11 }
 0xaad   : > { %v2364_v4 = vrot.slane %v2357_v63, %v3671_v29  ;;  %v2372_v7 = vrot.slane %v3209_v0, %v3671_v29  ;;  %v2380_v8 = vrot.slane %v2373_v2, %v3671_v29  ;;  %v2388_v9 = vrot.slane %v3210_v3, %v3671_v29 }
 0xaaf   : > { %v2389_v10 = vcombine.low %v2364_v4, %v2372_v7  ;;  %v2390_v12 = vcombine.high %v2364_v4, %v2372_v7  ;;  %v2405_v13 = vcombine.low %v2380_v8, %v2388_v9  ;;  %v2406_v14 = vcombine.high %v2380_v8, %v2388_v9 }
 0xab1   : > { %v2397_v15 = vrot.slane %v2389_v10, %v3683_v36  ;;  %v2404_v16 = vrot.slane %v2390_v12, %v3683_v36  ;;  %v2413_v18 = vrot.slane %v2405_v13, %v3683_v36  ;;  %v2420_v20 = vrot.slane %v2406_v14, %v3683_v36  ;;  %v3452_v13 = vld [vmem:[%s4100_s14] sm:$0xff]  }
 0xab3   : > { %v2421_v25 = vcombine.low %v2397_v15, %v2413_v18  ;;  %v2422_v28 = vcombine.high %v2397_v15, %v2413_v18  ;;  %v2423_v30 = vcombine.low %v2404_v16, %v2420_v20  ;;  %v2424_v34 = vcombine.high %v2404_v16, %v2420_v20 }
 0xab5   : > { %v2425_v39 = vpack.c.bf16 %v2421_v25, %v2421_v25  ;;  %v2426_v23 = vpack.c.bf16 %v2422_v28, %v2422_v28  ;;  %v2427_v41 = vpack.c.bf16 %v2423_v30, %v2423_v30  ;;  %v2428_v31 = vpack.c.bf16 %v2424_v34, %v2424_v34  ;;  %v3453_v28 = vld [vmem:[%s4100_s14 + $0x8] sm:$0xff]  }
 0xab7   : > { %v2665_v6 = vsel %vm1410_vm3, %v2425_v39, 0  ;;  %v2711_v40 = vsel %vm1410_vm3, %v2426_v23, 0  ;;  %v2757_v37 = vsel %vm1410_vm3, %v2427_v41, 0  ;;  %v2803_v38 = vsel %vm1410_vm3, %v2428_v31, 0 }
 0xab8   : > { %3392 = vmatpush3.bf16.msra.mxu1 %v2665_v6  ;;  %3398 = vmatpush3.bf16.msra.mxu0 %v2711_v40 }
 0xab9   : > { %3403 = vmatprep.subr.bf16.mxu1 %v3498_v1  ;;  %3409 = vmatprep.subr.bf16.mxu0 %v3498_v1 }
 0xabb   : > { %3394 = vmatmul.mubr.msk.bf16.vlgmr.msra.gmra.mrb[32].mxu1 %vm1174_vm2, %v2657_v33  ;;  %3400 = vmatmul.mubr.msk.bf16.vlgmr.msra.gmra.mrb[36].mxu0 %vm1174_vm2, %v2658_v43 }
 0xabc   : > { %3404 = vmatpush3.bf16.msra.mxu1 %v2757_v37  ;;  %3410 = vmatpush3.bf16.msra.mxu0 %v2803_v38 }
 0xabd   : > { %3405 = vmatprep.mubr.msk.bf16.mxu1 %vm3499_vm0, %v3498_v1  ;;  %3411 = vmatprep.mubr.msk.bf16.mxu0 %vm3499_vm0, %v3498_v1 }
 0xabe   : > { %3415 = vmatprep.subr.bf16.mxu1 %v3498_v1 }
 0xad2   : > { %v2648_v44 = vpop.xlane.xlu0 %2647 }
 0xad3   : > { %3484 = vrcp.f32 %v2648_v44  ;;  %v2645_v21 = vpop.xlane.xlu1 %2644 }
 0xad4   : > { %3486 = vrcp.f32 %v2645_v21 }
 0xadd   : > { %v3485_v22 = vpop.eup %3484 }
 0xade   : > { %v3487_v45 = vpop.eup %3486  ;;  %v2656_v46 = vmul.f32 %v3485_v22, %v3991_v26 }
 0xadf   : > { %v2655_v47 = vmul.f32 %v3487_v45, %v3993_v27 }
 0xae0   : > { %v2660_v48 = vpack.c.bf16 %v2656_v46, %v2656_v46 }
 0xae1   : > { %v2659_v49 = vpack.c.bf16 %v2655_v47, %v2655_v47 }
 0xae2   : > { %3412 = vmatmul.mubr.msk.bf16.vlgmr.msra.gmra.mrb[40].mxu0 %vm1174_vm2, %v2660_v48  ;;  %v3221_v48 = vld [vmem:[%s4101_s15] ss:$0 sm:$0xff] }
 0xae3   : > { %3406 = vmatmul.mubr.msk.bf16.vlgmr.msra.gmra.mrb[36].mxu1 %vm1174_vm2, %v2659_v49 }
 0xae4   : > { %3419 = vmatprep.mubr.msk.bf16.mxu1 %vm3499_vm0, %v3498_v1  ;;  %3416 = vmatpush3.bf16.msra.mxu1 %v3452_v13 }
 0xae5   : > { %3417 = vmatprep.subr.bf16.mxu1 %v3498_v1 }
 0xae8   : > { %3418 = vmatpush3.bf16.msra.mxu1 %v3453_v28 }
 0xb8e   : > { %v2701_v50 = vpop.f32.mrb[32].mxu1  ;;  %v2747_v51 = vpop.f32.mrb[36].mxu0 }
 0xb8f   : > { %v3395_v52 = vpop.f32.mrb[33].mxu1  ;;  %v3401_v42 = vpop.f32.mrb[37].mxu0 }
 0xb90   : > { %v2704_v53 = vpop.f32.mrb[34].mxu1  ;;  %v2750_v54 = vpop.f32.mrb[38].mxu0 }
 0xb91   : > { %v3396_v55 = vpop.f32.mrb[35].mxu1  ;;  %v3402_v56 = vpop.f32.mrb[39].mxu0 }
 0xbb5   : > { %v2839_v26 = vpop.f32.mrb[40].mxu0 }
 0xbb6   : > { %v2793_v57 = vpop.f32.mrb[36].mxu1  ;;  %v2861_v27 = vcombine.low %v2747_v51, %v2839_v26  ;;  %v2862_v32 = vcombine.high %v2747_v51, %v2839_v26  ;;  %v3413_v58 = vpop.f32.mrb[41].mxu0 }
 0xbb7   : > { %v2845_v5 = vcombine.low %v2701_v50, %v2793_v57  ;;  %v2846_v59 = vcombine.high %v2701_v50, %v2793_v57  ;;  %v3407_v60 = vpop.f32.mrb[37].mxu1  ;;  %v2842_v61 = vpop.f32.mrb[42].mxu0 }
 0xbb8   : > { %v2869_v62 = vrot.slane %v2861_v27, %v3671_v29  ;;  %v2876_v63 = vrot.slane %v2862_v32, %v3671_v29  ;;  %v2796_v0 = vpop.f32.mrb[38].mxu1  ;;  %v3414_v2 = vpop.f32.mrb[43].mxu0  ;;  %v3226_v61 = vld [vmem:[%s4103_s17] ss:$0 sm:$0xff] }
 0xbb9   : > { %v2853_v3 = vrot.slane %v2845_v5, %v3671_v29  ;;  %v2860_v4 = vrot.slane %v2846_v59, %v3671_v29  ;;  %v3408_v7 = vpop.f32.mrb[39].mxu1 }
 0xbbb   : > { %v2877_v8 = vcombine.low %v2853_v3, %v2869_v62  ;;  %v2878_v9 = vcombine.high %v2853_v3, %v2869_v62  ;;  %v2893_v10 = vcombine.low %v2860_v4, %v2876_v63  ;;  %v2894_v12 = vcombine.high %v2860_v4, %v2876_v63 }
 0xbbd   : > { %v2885_v14 = vrot.slane %v2877_v8, %v3683_v36  ;;  %v2892_v15 = vrot.slane %v2878_v9, %v3683_v36  ;;  %v2901_v16 = vrot.slane %v2893_v10, %v3683_v36  ;;  %v2908_v17 = vrot.slane %v2894_v12, %v3683_v36 }
 0xbbf   : > { %v2913_v18 = vcombine.low %v2885_v14, %v2892_v15  ;;  %v3219_v20 = vcombine.high %v2885_v14, %v2892_v15  ;;  %v2929_v24 = vcombine.low %v2901_v16, %v2908_v17  ;;  %v3220_v25 = vcombine.high %v2901_v16, %v2908_v17 }
 0xbc1   : > { %v2920_v30 = vrot.slane %v2913_v18, %v3671_v29  ;;  %v2928_v34 = vrot.slane %v3219_v20, %v3671_v29  ;;  %v2936_v35 = vrot.slane %v2929_v24, %v3671_v29  ;;  %v2944_v11 = vrot.slane %v3220_v25, %v3671_v29 }
 0xbc3   : > { %v2946_v39 = vcombine.high %v2920_v30, %v2928_v34  ;;  %v2962_v23 = vcombine.high %v2936_v35, %v2944_v11  ;;  %v2945_v1 = vcombine.low %v2920_v30, %v2928_v34  ;;  %v2961_v6 = vcombine.low %v2936_v35, %v2944_v11 }
 0xbc5   : > { %v2960_v40 = vrot.slane %v2946_v39, %v3683_v36  ;;  %v2976_v41 = vrot.slane %v2962_v23, %v3683_v36  ;;  %v2953_v31 = vrot.slane %v2945_v1, %v3683_v36  ;;  %v2969_v33 = vrot.slane %v2961_v6, %v3683_v36 }
 0xbc7   : > { %v2979_v43 = vcombine.low %v2960_v40, %v2976_v41  ;;  %v2978_v37 = vcombine.high %v2953_v31, %v2969_v33  ;;  %v2980_v38 = vcombine.high %v2960_v40, %v2976_v41  ;;  %v2977_v44 = vcombine.low %v2953_v31, %v2969_v33 }
 0xbc9   : > { %2986 = vrot.lane.b32.xlu1 %v2979_v43, %s4115_s26  ;;  %2982 = vrot.lane.b32.xlu0 %v2978_v37, %s4116_s29 }
 0xbcd   : > { %2990 = vrot.lane.b32.xlu1 %v2980_v38, %s4117_s19 }
 0xc3b   : > { %v2987_v29 = vpop.permute.xlu1 %2986  ;;  %v2983_v21 = vpop.permute.xlu0 %2982 }
 0xc3c   : > { %v2993_v22 = vsel %vm1174_vm2, %v2977_v44, %v2983_v21 }
 0xc3d   : > { %v2994_v46 = vsel %vm1741_vm4, %v2993_v22, %v2987_v29 }
 0xc3f   : > { %v2991_v45 = vpop.permute.xlu1 %2990 }
 0xc40   : > { %v2995_v47 = vsel %vm1743_vm5, %v2994_v46, %v2991_v45 }
 0xc41   : > { %v2996_v36 = vpack.c.bf16 %v2995_v47, %v2995_v47 }
 0xc43   : > { %3420 = vmatmul.mubr.msk.bf16.vlgmr.msra.gmra.mrb[40].mxu1 %vm615_vm1, %v2996_v36 }
 0xd16   : > { %v3057_v49 = vpop.f32.mrb[40].mxu1 }
 0xd17   : > { %v3058_v50 = vadd.f32 %v3221_v48, %v3057_v49  ;;  %v3421_v51 = vpop.f32.mrb[41].mxu1 }
 0xd18   : > { %v3060_v52 = vpop.f32.mrb[42].mxu1 }
 0xd19   : > { %v3422_v42 = vpop.f32.mrb[43].mxu1  ;;  %v3063_v53 = vadd.f32 %v3058_v50, %v3884_v19  ;;  %v3225_v19 = vld [vmem:[%s4102_s16] ss:$0 sm:$0xff] }
 0xd1b   : > { %v3064_v54 = vsel %vm615_vm1, %v3063_v53, 0.0 }
 0xd1c   : > { %3065 = vadd.xlane.f32.xlu0 %v3064_v54 }
 0xda9   : > { %v3066_v55 = vpop.xlane.xlu0 %3065 }
 0xdaa   : > { %v3067_v56 = vmul.f32 0.03125, %v3066_v55 }
 0xdac   : > { %v3068_v26 = vsub.f32 %v3063_v53, %v3067_v56 }
 0xdae   : > { %v3069_v57 = vmul.f32 %v3068_v26, %v3068_v26 }
 0xdb0   : > { %v3070_v27 = vsel %vm615_vm1, %v3069_v57, 0.0 }
 0xdb1   : > { %3071 = vadd.xlane.f32.xlu1 %v3070_v27 }
 0xe3e   : > { %v3072_v32 = vpop.xlane.xlu1 %3071 }
 0xe3f   : > { %v3073_v58 = vmul.f32 0.03125, %v3072_v32 }
 0xe41   : > { %v3074_v5 = vadd.f32 1e-05, %v3073_v58 }
 0xe43   : > { %3488 = vrsqrt.f32 %v3074_v5 }
 0xe4d   : > { %v3489_v59 = vpop.eup %3488 }
 0xe4e   : > { %v3076_v60 = vmul.f32 %v3489_v59, %v3068_v26 }
 0xe50   : > { %v3084_v62 = vmul.f32 %v3225_v19, %v3076_v60 }
 0xe52   : > { %v3092_v63 = vadd.f32 %v3226_v61, %v3084_v62 }
 0xe54   : > { %3093 = vst.msk [vmem:[%s587_s2] sm:$0xff] %vm615_vm1, %v3092_v63 }
 0xe55 PF: > { %s28_s27 = sadd.s32 1, %s3496_s27  }
 0xe56   : > { %p25_p4 = scmp.ge.s32.totalorder %s28_s27, 4  }
 0xe58   :  { %27 = sbr.rel (!%p25_p4) target bundleno = 4 (0x4), region = 125 }

</bundles_post_ra>
